<compile_context>
chip_gen: v5e
topology: v5e:2x2
jax: 0.10.0
libtpu: 0.0.40
codegen_flags: <defaults>
</compile_context>

<pallas_src>
import functools

import jax
import jax.numpy as jnp
from jax import lax
from jax.experimental import pallas as pl
from jax.experimental.pallas import tpu as pltpu

EPS = 1e-5


def _round_up(x, m):
    return (x + m - 1) // m * m


def _vmem_budget():
    """Per-generation scoped-VMEM limit and live-tile budget."""
    kind = ""
    try:
        kind = jax.devices()[0].device_kind.lower()
    except Exception:
        pass
    if any(t in kind for t in ("v4", "v5", "v6")):
        return 96 * 2**20, 48 * 2**20          # 128 MiB physical VMEM
    return 36 * 2**20, 14 * 2**20              # v7x (64 MiB VMEM) / unknown


VMEM_LIMIT, TILE_BUDGET = _vmem_budget()


def _lane_pad(c):
    """Round a channel count up to a lane-dense multiple of 128."""
    return _round_up(max(c, 128), 128)


# ---------------------------------------------------------------------------
# Pallas kernels
# ---------------------------------------------------------------------------
def _mm_bias_act_kernel(x_ref, w_ref, b_ref, o_ref, *, relu):
    acc = jnp.dot(x_ref[...], w_ref[...], preferred_element_type=jnp.float32)
    out = acc + b_ref[...]
    if relu:
        out = jnp.maximum(out, 0.0)
    o_ref[...] = out.astype(o_ref.dtype)


def _mm_bias_add_identity_relu_kernel(x_ref, w_ref, b_ref, r_ref, o_ref):
    acc = jnp.dot(x_ref[...], w_ref[...], preferred_element_type=jnp.float32)
    out = acc + b_ref[...] + r_ref[...].astype(jnp.float32)
    o_ref[...] = jnp.maximum(out, 0.0).astype(o_ref.dtype)


def _mm_bias_proj_add_relu_kernel(x_ref, w_ref, b_ref,
                                  r_ref, wr_ref, br_ref, o_ref):
    # conv3 + bn3 and the projection-shortcut conv + bn, fused with add + relu.
    main = jnp.dot(x_ref[...], w_ref[...], preferred_element_type=jnp.float32)
    main = main + b_ref[...]
    sc = jnp.dot(r_ref[...], wr_ref[...], preferred_element_type=jnp.float32)
    sc = sc + br_ref[...]
    o_ref[...] = jnp.maximum(main + sc, 0.0).astype(o_ref.dtype)


def _conv3x3_kernel(x_ref, w_ref, b_ref, o_ref, *, stride, ext, th, Wo):
    """3x3 conv row-tile: tap-packed im2col in VMEM + ONE matmul.

    x_ref: (1, s2, Hq, Wq, C) full padded image (resident across row/cout
    tiles), w_ref: (9*C, tn) tap-packed folded weights, o_ref: (1, th*Wo, tn).
    """
    h = pl.program_id(2)
    row0 = h * th
    s2 = stride * stride
    C = x_ref.shape[-1]

    # One contiguous, dynamic-start window per phase (stride==1 -> one phase).
    wins = [x_ref[0, p, pl.ds(row0, th + ext), :, :] for p in range(s2)]

    taps = []
    for di in range(3):
        for dj in range(3):
            ph = (di % stride) * stride + (dj % stride)
            r0 = di // stride
            c0 = dj // stride
            patch = wins[ph][r0:r0 + th, c0:c0 + Wo, :]       # (th, Wo, C)
            taps.append(patch.reshape(th * Wo, C))
    big = jnp.concatenate(taps, axis=-1)                      # (th*Wo, 9*C)

    acc = jnp.dot(big, w_ref[...], preferred_element_type=jnp.float32)
    out = jnp.maximum(acc + b_ref[...], 0.0)
    o_ref[...] = out.reshape(1, th * Wo, out.shape[-1]).astype(o_ref.dtype)


# ---------------------------------------------------------------------------
# Tile-size derivation
# ---------------------------------------------------------------------------
def _pick_tn(cout, cap=512):
    if cout % 128 != 0:
        return cout                      # small un-padded Cout: full dim
    for t in (512, 256, 128):
        if t <= cap and cout % t == 0:
            return t
    return 128


def _pick_tm(m, row_bytes, fixed_bytes, budget):
    """Largest M tile fitting the VMEM budget (cdiv grid, no divisibility)."""
    tm = 8
    for t in (1024, 512, 256, 128, 64, 32, 16, 8):
        if fixed_bytes + t * row_bytes <= budget:
            tm = t
            break
    m8 = _round_up(m, 8)
    tm = max(8, min(tm, m8))
    # Prefer >= 2 M-steps so the "parallel" axis can feed both v7x cores.
    if m8 >= 256 and pl.cdiv(m, tm) < 2:
        tm = max(8, _round_up(pl.cdiv(m, 2), 8))
    return tm


def _pick_th(Ho, Wo, cin_p):
    """Row tile for conv2: th | Ho, tap-packed patch <= ~4 MiB, sublane-
    aligned rows, and >= 2 row tiles when Ho allows."""
    max_rows = max(8, min(1024, (4 * 2**20) // max(1, 9 * cin_p * 2)))
    divs = [d for d in range(1, Ho + 1) if Ho % d == 0]
    ok = [d for d in divs
          if d * Wo <= max_rows and (d == Ho or (d * Wo) % 8 == 0)]
    if not ok:
        ok = [d for d in divs if d == Ho or (d * Wo) % 8 == 0] or [Ho]
    two = [d for d in ok if Ho // d >= 2]
    return max(two) if two else max(ok)


# ---------------------------------------------------------------------------
# Fused matmul + bias (+ residual / projection shortcut) + ReLU
# ---------------------------------------------------------------------------
def matmul_bn_act(x2d, w, bias, *, relu, out_dtype,
                  residual=None, res_w=None, res_bias=None):
    """out = act(x2d @ w + bias [+ shortcut]) with BN scale pre-folded in w."""
    M, K = x2d.shape
    Kw, Cout = w.shape
    assert K == Kw
    tn = _pick_tn(Cout)

    x_b = jnp.dtype(x2d.dtype).itemsize
    w_b = jnp.dtype(w.dtype).itemsize
    o_b = jnp.dtype(out_dtype).itemsize

    fixed = 2 * (K * tn * w_b + tn * 4)                 # dbl-buffered weights/bias
    row = 2 * (K * x_b + tn * o_b)                      # dbl-buffered per-M-row
    flops = 2 * M * K * Cout
    bytes_accessed = x2d.nbytes + w.nbytes + bias.nbytes + M * Cout * o_b

    if residual is not None:
        Kr = residual.shape[1]
        row += 2 * Kr * jnp.dtype(residual.dtype).itemsize
        bytes_accessed += residual.nbytes
        if res_w is not None:
            fixed += 2 * (Kr * tn * jnp.dtype(res_w.dtype).itemsize + tn * 4)
            flops += 2 * M * Kr * Cout
            bytes_accessed += res_w.nbytes + res_bias.nbytes

    tm = _pick_tm(M, row, fixed, TILE_BUDGET)
    grid = (pl.cdiv(M, tm), Cout // tn)                 # ragged M: Pallas masks

    in_specs = [
        pl.BlockSpec((tm, K), lambda i, j: (i, 0)),
        pl.BlockSpec((K, tn), lambda i, j: (0, j)),
        pl.BlockSpec((1, tn), lambda i, j: (0, j)),
    ]
    args = [x2d, w, bias]

    if residual is None:
        kernel = functools.partial(_mm_bias_act_kernel, relu=relu)
    elif res_w is None:
        assert relu
        kernel = _mm_bias_add_identity_relu_kernel
        in_specs.append(pl.BlockSpec((tm, tn), lambda i, j: (i, j)))
        args.append(residual)
    else:
        assert relu
        kernel = _mm_bias_proj_add_relu_kernel
        Kr = residual.shape[1]
        in_specs += [
            pl.BlockSpec((tm, Kr), lambda i, j: (i, 0)),
            pl.BlockSpec((Kr, tn), lambda i, j: (0, j)),
            pl.BlockSpec((1, tn), lambda i, j: (0, j)),
        ]
        args += [residual, res_w, res_bias]

    return pl.pallas_call(
        kernel,
        out_shape=jax.ShapeDtypeStruct((M, Cout), out_dtype),
        grid_spec=pltpu.PrefetchScalarGridSpec(
            num_scalar_prefetch=0,
            grid=grid,
            in_specs=in_specs,
            out_specs=pl.BlockSpec((tm, tn), lambda i, j: (i, j)),
        ),
        compiler_params=pltpu.CompilerParams(
            dimension_semantics=("parallel", "parallel"),
            vmem_limit_bytes=VMEM_LIMIT),
        cost_estimate=pl.CostEstimate(
            flops=int(flops), transcendentals=0,
            bytes_accessed=int(bytes_accessed)),
    )(*args)


# ---------------------------------------------------------------------------
# 3x3 conv (pad=1, stride) + BN + ReLU
# ---------------------------------------------------------------------------
def conv3x3_bn_relu(x_nhwc, w_packed, bias, *, stride):
    """x_nhwc: (N,H,W,C) bf16, w_packed: (9*C, Cout) bf16 tap-packed, folded."""
    N, H, W, C = x_nhwc.shape
    Cout = w_packed.shape[1]
    Ho = (H - 1) // stride + 1
    Wo = (W - 1) // stride + 1
    ext = 2 // stride                      # extra rows/cols a tap may reach
    Hq, Wq = Ho + ext, Wo + ext
    s2 = stride * stride

    # Zero-pad (conv pad=1, plus alignment zeros that valid outputs never read)
    Hp_need, Wp_need = stride * Hq, stride * Wq
    xp = jnp.pad(x_nhwc, ((0, 0),
                          (1, 1 + Hp_need - (H + 2)),
                          (1, 1 + Wp_need - (W + 2)),
                          (0, 0)))
    if stride == 1:
        xph = xp[:, None]                  # (N,1,Hq,Wq,C) — reshape, no copy
    else:
        # TODO(synk): phase split still costs one extra HBM pass at stride>1.
        phases = []
        for a in range(stride):
            for b in range(stride):
                phases.append(lax.slice(
                    xp, (0, a, b, 0),
                    (N, a + (Hq - 1) * stride + 1,
                     b + (Wq - 1) * stride + 1, C),
                    (1, stride, stride, 1)))
        xph = jnp.stack(phases, axis=1)    # (N, s2, Hq, Wq, C)

    th = _pick_th(Ho, Wo, C)
    tn = _pick_tn(Cout, cap=256)
    grid = (N, Cout // tn, Ho // th)       # row tiles innermost -> weight reuse

    kernel = functools.partial(_conv3x3_kernel,
                               stride=stride, ext=ext, th=th, Wo=Wo)
    flops = 2 * N * Ho * Wo * 9 * C * Cout
    bytes_accessed = (xph.nbytes + w_packed.nbytes + bias.nbytes
                      + N * Ho * Wo * Cout * 2)

    out = pl.pallas_call(
        kernel,
        out_shape=jax.ShapeDtypeStruct((N, Ho * Wo, Cout), jnp.bfloat16),
        grid_spec=pltpu.PrefetchScalarGridSpec(
            num_scalar_prefetch=0,
            grid=grid,
            in_specs=[
                # Full padded image: same block across (j, h) -> stays resident.
                pl.BlockSpec((1, s2, Hq, Wq, C), lambda n, j, h: (n, 0, 0, 0, 0)),
                pl.BlockSpec((9 * C, tn), lambda n, j, h: (0, j)),
                pl.BlockSpec((1, tn), lambda n, j, h: (0, j)),
            ],
            out_specs=pl.BlockSpec((1, th * Wo, tn), lambda n, j, h: (n, h, j)),
        ),
        compiler_params=pltpu.CompilerParams(
            dimension_semantics=("parallel", "parallel", "parallel"),
            vmem_limit_bytes=VMEM_LIMIT),
        cost_estimate=pl.CostEstimate(
            flops=int(flops), transcendentals=0,
            bytes_accessed=int(bytes_accessed)),
    )(xph, w_packed, bias)
    return out, (Ho, Wo)


# ---------------------------------------------------------------------------
# BN folding into weights (f32 math, bf16 cast) + channel padding
# ---------------------------------------------------------------------------
def fold_bn(bn):
    gamma, beta, mean, var = bn
    scale = gamma / jnp.sqrt(var + EPS)
    bias = beta - mean * scale
    return scale, bias


def _fold_conv1x1_bn(w_oihw, bn, cout_p, cin_p=None):
    Cout, Cin = w_oihw.shape[:2]
    scale, bias = fold_bn(bn)
    w2d = jnp.transpose(w_oihw[:, :, 0, 0], (1, 0)) * scale[None, :]   # f32
    kp = cin_p if cin_p is not None else Cin
    w2d = jnp.pad(w2d, ((0, kp - Cin), (0, cout_p - Cout))).astype(jnp.bfloat16)
    b = jnp.pad(bias, (0, cout_p - Cout)).reshape(1, cout_p).astype(jnp.float32)
    return w2d, b


def _fold_conv3x3_bn(w_oihw, bn, cin_p, cout_p):
    Cout, Cin = w_oihw.shape[:2]
    scale, bias = fold_bn(bn)
    wt = jnp.transpose(w_oihw, (2, 3, 1, 0)).reshape(9, Cin, Cout)     # tap-major
    wt = wt * scale[None, None, :]                                     # f32
    wt = jnp.pad(wt, ((0, 0), (0, cin_p - Cin), (0, cout_p - Cout)))
    w_packed = wt.reshape(9 * cin_p, cout_p).astype(jnp.bfloat16)
    b = jnp.pad(bias, (0, cout_p - Cout)).reshape(1, cout_p).astype(jnp.float32)
    return w_packed, b


# ---------------------------------------------------------------------------
# Bottleneck forward pass
# ---------------------------------------------------------------------------
def bottleneck_forward(x_nchw, p, stride):
    """Pallas Bottleneck forward.  x_nchw: (N, Cin, H, W) float32."""
    x_bf = jnp.transpose(x_nchw.astype(jnp.bfloat16), (0, 2, 3, 1))    # bf16 NHWC
    N, H, W, Cin = x_bf.shape
    planes = p["w1"].shape[0]
    Cout = 4 * planes
    planes_p = _lane_pad(planes)
    identity = (stride == 1 and Cin == Cout)
    # Identity shortcut must match the residual's channel count; in real
    # ResNets that is >= 256 so no padding is needed there anyway.
    cout_p = Cout if identity else _lane_pad(Cout)

    # conv1 (1x1) + bn1 + relu  ->  bf16, lane-padded channels
    w1, b1 = _fold_conv1x1_bn(p["w1"], p["bn1"], planes_p)
    out1 = matmul_bn_act(x_bf.reshape(N * H * W, Cin), w1, b1,
                         relu=True, out_dtype=jnp.bfloat16)
    out1 = out1.reshape(N, H, W, planes_p)

    # conv2 (3x3, stride, pad=1) + bn2 + relu  ->  tap-packed single matmul
    w2, b2 = _fold_conv3x3_bn(p["w2"], p["bn2"], planes_p, planes_p)
    out2, (Ho, Wo) = conv3x3_bn_relu(out1, w2, b2, stride=stride)
    out2 = out2.reshape(N * Ho * Wo, planes_p)

    # conv3 (1x1) + bn3 + shortcut + relu, fused in a single kernel
    w3, b3 = _fold_conv1x1_bn(p["w3"], p["bn3"], cout_p, cin_p=planes_p)
    if identity:
        xs = x_bf.reshape(N * Ho * Wo, Cin)                 # bf16 residual
        out = matmul_bn_act(out2, w3, b3, relu=True, out_dtype=jnp.bfloat16,
                            residual=xs)
    else:
        xs = x_bf[:, ::stride, ::stride, :].reshape(N * Ho * Wo, Cin)
        ws, bs = _fold_conv1x1_bn(p["ws"], p["bns"], cout_p)
        out = matmul_bn_act(out2, w3, b3, relu=True, out_dtype=jnp.bfloat16,
                            residual=xs, res_w=ws, res_bias=bs)

    if cout_p != Cout:
        out = out[:, :Cout]                                 # drop padded lanes
    out = out.reshape(N, Ho, Wo, Cout)
    return jnp.transpose(out, (0, 3, 1, 2)).astype(jnp.float32)   # NCHW f32


# ---------------------------------------------------------------------------
# Pure-JAX reference (NCHW, f32, same eval-mode BN semantics)
# ---------------------------------------------------------------------------
def ref_bottleneck(x, p, stride):
    def conv(x, w, s=1, pad=0):
        return lax.conv_general_dilated(
            x, w, (s, s), [(pad, pad), (pad, pad)],
            dimension_numbers=("NCHW", "OIHW", "NCHW"))

    def bn(x, b):
        g, be, m, v = b
        inv = g / jnp.sqrt(v + EPS)
        return x * inv[None, :, None, None] + (be - m * inv)[None, :, None, None]

    planes = p["w1"].shape[0]
    out = jax.nn.relu(bn(conv(x, p["w1"]), p["bn1"]))
    out = jax.nn.relu(bn(conv(out, p["w2"], stride, 1), p["bn2"]))
    out = bn(conv(out, p["w3"]), p["bn3"])
    if stride != 1 or x.shape[1] != 4 * planes:
        sc = bn(conv(x, p["ws"], stride), p["bns"])
    else:
        sc = x
    return jax.nn.relu(out + sc)


# ---------------------------------------------------------------------------
# Deterministic parameter construction (matches module shapes)
# ---------------------------------------------------------------------------
def make_params(key, in_planes, planes):
    exp = 4
    ks = jax.random.split(key, 16)

    def w(k, shape):
        return (0.1 * jax.random.normal(k, shape)).astype(jnp.float32)

    def bn(k, c):
        k1, k2, k3, k4 = jax.random.split(k, 4)
        gamma = 1.0 + 0.1 * jax.random.normal(k1, (c,))
        beta = 0.1 * jax.random.normal(k2, (c,))
        mean = 0.1 * jax.random.normal(k3, (c,))
        var = 0.5 + 0.5 * jnp.abs(jax.random.normal(k4, (c,)))
        return (gamma.astype(jnp.float32), beta.astype(jnp.float32),
                mean.astype(jnp.float32), var.astype(jnp.float32))

    return {
        "w1": w(ks[0], (planes, in_planes, 1, 1)),
        "bn1": bn(ks[1], planes),
        "w2": w(ks[2], (planes, planes, 3, 3)),
        "bn2": bn(ks[3], planes),
        "w3": w(ks[4], (exp * planes, planes, 1, 1)),
        "bn3": bn(ks[5], exp * planes),
        "ws": w(ks[6], (exp * planes, in_planes, 1, 1)),
        "bns": bn(ks[7], exp * planes),
    }


if __name__ == "__main__":
    key = jax.random.PRNGKey(0)
    kx, kp, kx2, kp2 = jax.random.split(key, 4)

    fwd = jax.jit(bottleneck_forward, static_argnums=2)

    # Projection-shortcut config (stride 2, channel change).
    batch, in_planes, planes, spatial, stride = 2, 16, 8, 16, 2
    x = jax.random.normal(kx, (batch, in_planes, spatial, spatial), jnp.float32)
    params = make_params(kp, in_planes, planes)
    out = jax.block_until_ready(fwd(x, params, stride))
    ref = jax.block_until_ready(ref_bottleneck(x, params, stride))
    assert out.shape == ref.shape == (batch, 4 * planes,
                                      spatial // stride, spatial // stride)
    err = float(jnp.max(jnp.abs(out - ref)))
    # bf16 matmul operands / bf16 intermediates (f32 accumulation) -> relaxed
    # tolerance vs the all-f32 reference.
    assert jnp.allclose(out, ref, atol=5e-2, rtol=5e-2), f"proj max err {err}"

    # Identity-shortcut config (stride 1, in_planes == 4*planes).
    batch2, planes2, spatial2 = 2, 8, 16
    x2 = jax.random.normal(kx2, (batch2, 4 * planes2, spatial2, spatial2),
                           jnp.float32)
    params2 = make_params(kp2, 4 * planes2, planes2)
    out2 = jax.block_until_ready(fwd(x2, params2, 1))
    ref2 = jax.block_until_ready(ref_bottleneck(x2, params2, 1))
    assert out2.shape == ref2.shape
    err2 = float(jnp.max(jnp.abs(out2 - ref2)))
    assert jnp.allclose(out2, ref2, atol=5e-2, rtol=5e-2), f"id max err {err2}"

    print("KERNEL_OK")
</pallas_src>

<mosaic_0001>
module attributes {stable_mosaic.version = 11 : i64} {
  func.func @_mm_bias_act_kernel(%arg0: i32, %arg1: i32, %arg2: memref<256x16xbf16, #tpu.memory_space<vmem>>, %arg3: memref<16x128xbf16, #tpu.memory_space<vmem>>, %arg4: memref<1x128xf32, #tpu.memory_space<vmem>>, %arg5: memref<256x128xbf16, #tpu.memory_space<vmem>>) attributes {dimension_semantics = [#tpu.dimension_semantics<parallel>, #tpu.dimension_semantics<parallel>], iteration_bounds = array<i64: 2, 1>, scalar_prefetch = 0 : i64, scratch_operands = 0 : i64, tpu.core_type = #tpu.core_type<tc>, window_params = [{transform_indices = @transform_0, window_bounds = array<i64: 256, 16>}, {transform_indices = @transform_1, window_bounds = array<i64: 16, 128>}, {transform_indices = @transform_2, window_bounds = array<i64: 1, 128>}, {transform_indices = @transform_3, window_bounds = array<i64: 256, 128>}]} {
    %c0 = arith.constant 0 : index
    %c0_0 = arith.constant 0 : index
    %0 = vector.load %arg2[%c0, %c0_0] : memref<256x16xbf16, #tpu.memory_space<vmem>>, vector<256x16xbf16>
    %c0_1 = arith.constant 0 : index
    %c0_2 = arith.constant 0 : index
    %1 = vector.load %arg3[%c0_1, %c0_2] : memref<16x128xbf16, #tpu.memory_space<vmem>>, vector<16x128xbf16>
    %cst = arith.constant dense<0.000000e+00> : vector<256x128xf32>
    %2 = tpu.matmul %0, %1, %cst {dimension_numbers = #tpu.dot_dimension_numbers<[1], [0], [0], [1], [0, 0, 1, 1], [], []>} : vector<256x16xbf16>, vector<16x128xbf16>, vector<256x128xf32> -> vector<256x128xf32>
    %c0_3 = arith.constant 0 : index
    %c0_4 = arith.constant 0 : index
    %3 = vector.load %arg4[%c0_3, %c0_4] : memref<1x128xf32, #tpu.memory_space<vmem>>, vector<1x128xf32>
    %4 = vector.broadcast %3 : vector<1x128xf32> to vector<256x128xf32>
    %5 = arith.addf %2, %4 : vector<256x128xf32>
    %cst_5 = arith.constant 0.000000e+00 : f32
    %6 = vector.broadcast %cst_5 : f32 to vector<256x128xf32>
    %7 = arith.maximumf %5, %6 : vector<256x128xf32>
    %8 = arith.truncf %7 : vector<256x128xf32> to vector<256x128xbf16>
    %c0_6 = arith.constant 0 : index
    %c0_7 = arith.constant 0 : index
    %9 = vector.load %arg5[%c0_6, %c0_7] : memref<256x128xbf16, #tpu.memory_space<vmem>>, vector<256x128xbf16>
    tpu.vector_store %arg5[%c0_6, %c0_7], %8 {strides = array<i32>} : memref<256x128xbf16, #tpu.memory_space<vmem>>, vector<256x128xbf16>,
    return
  }
  func.func @transform_0(%arg0: i32, %arg1: i32) -> (i32, i32) {
    %c0_i32 = arith.constant 0 : i32
    %c0_i32_0 = arith.constant 0 : i32
    return %arg0, %c0_i32 : i32, i32
  }
  func.func @transform_1(%arg0: i32, %arg1: i32) -> (i32, i32) {
    %c0_i32 = arith.constant 0 : i32
    %c0_i32_0 = arith.constant 0 : i32
    return %c0_i32, %arg1 : i32, i32
  }
  func.func @transform_2(%arg0: i32, %arg1: i32) -> (i32, i32) {
    %c0_i32 = arith.constant 0 : i32
    %c0_i32_0 = arith.constant 0 : i32
    return %c0_i32, %arg1 : i32, i32
  }
  func.func @transform_3(%arg0: i32, %arg1: i32) -> (i32, i32) {
    %c0_i32 = arith.constant 0 : i32
    return %arg0, %arg1 : i32, i32
  }
}

module attributes {stable_mosaic.version = 11 : i64} {
  func.func @_conv3x3_kernel(%arg0: i32, %arg1: i32, %arg2: i32, %arg3: memref<1x4x9x9x128xbf16, #tpu.memory_space<vmem>>, %arg4: memref<1152x128xbf16, #tpu.memory_space<vmem>>, %arg5: memref<1x128xf32, #tpu.memory_space<vmem>>, %arg6: memref<1x32x128xbf16, #tpu.memory_space<vmem>>) attributes {dimension_semantics = [#tpu.dimension_semantics<parallel>, #tpu.dimension_semantics<parallel>, #tpu.dimension_semantics<parallel>], iteration_bounds = array<i64: 2, 1, 2>, scalar_prefetch = 0 : i64, scratch_operands = 0 : i64, tpu.core_type = #tpu.core_type<tc>, window_params = [{transform_indices = @transform_0, window_bounds = array<i64: 1, 4, 9, 9, 128>}, {transform_indices = @transform_1, window_bounds = array<i64: 1152, 128>}, {transform_indices = @transform_2, window_bounds = array<i64: 1, 128>}, {transform_indices = @transform_3, window_bounds = array<i64: 1, 32, 128>}]} {
    %c4_i32 = arith.constant 4 : i32
    %0 = arith.muli %arg2, %c4_i32 : i32
    %c0 = arith.constant 0 : index
    %c0_0 = arith.constant 0 : index
    %1 = arith.index_cast %0 : i32 to index
    %c0_1 = arith.constant 0 : index
    %c0_2 = arith.constant 0 : index
    %2 = vector.load %arg3[%c0, %c0_0, %1, %c0_1, %c0_2] : memref<1x4x9x9x128xbf16, #tpu.memory_space<vmem>>, vector<1x1x5x9x128xbf16>
    %3 = vector.shape_cast %2 : vector<1x1x5x9x128xbf16> to vector<5x9x128xbf16>
    %c0_3 = arith.constant 0 : index
    %c1 = arith.constant 1 : index
    %4 = arith.index_cast %0 : i32 to index
    %c0_4 = arith.constant 0 : index
    %c0_5 = arith.constant 0 : index
    %5 = vector.load %arg3[%c0_3, %c1, %4, %c0_4, %c0_5] : memref<1x4x9x9x128xbf16, #tpu.memory_space<vmem>>, vector<1x1x5x9x128xbf16>
    %6 = vector.shape_cast %5 : vector<1x1x5x9x128xbf16> to vector<5x9x128xbf16>
    %c0_6 = arith.constant 0 : index
    %c2 = arith.constant 2 : index
    %7 = arith.index_cast %0 : i32 to index
    %c0_7 = arith.constant 0 : index
    %c0_8 = arith.constant 0 : index
    %8 = vector.load %arg3[%c0_6, %c2, %7, %c0_7, %c0_8] : memref<1x4x9x9x128xbf16, #tpu.memory_space<vmem>>, vector<1x1x5x9x128xbf16>
    %9 = vector.shape_cast %8 : vector<1x1x5x9x128xbf16> to vector<5x9x128xbf16>
    %c0_9 = arith.constant 0 : index
    %c3 = arith.constant 3 : index
    %10 = arith.index_cast %0 : i32 to index
    %c0_10 = arith.constant 0 : index
    %c0_11 = arith.constant 0 : index
    %11 = vector.load %arg3[%c0_9, %c3, %10, %c0_10, %c0_11] : memref<1x4x9x9x128xbf16, #tpu.memory_space<vmem>>, vector<1x1x5x9x128xbf16>
    %12 = vector.shape_cast %11 : vector<1x1x5x9x128xbf16> to vector<5x9x128xbf16>
    %13 = vector.extract_strided_slice %3 {offsets = [0, 0, 0], sizes = [4, 8, 128], strides = [1, 1, 1]} : vector<5x9x128xbf16> to vector<4x8x128xbf16>
    %14 = vector.shape_cast %13 : vector<4x8x128xbf16> to vector<32x128xbf16>
    %15 = vector.extract_strided_slice %6 {offsets = [0, 0, 0], sizes = [4, 8, 128], strides = [1, 1, 1]} : vector<5x9x128xbf16> to vector<4x8x128xbf16>
    %16 = vector.shape_cast %15 : vector<4x8x128xbf16> to vector<32x128xbf16>
    %17 = vector.extract_strided_slice %3 {offsets = [0, 1, 0], sizes = [4, 8, 128], strides = [1, 1, 1]} : vector<5x9x128xbf16> to vector<4x8x128xbf16>
    %18 = vector.shape_cast %17 : vector<4x8x128xbf16> to vector<32x128xbf16>
    %19 = vector.extract_strided_slice %9 {offsets = [0, 0, 0], sizes = [4, 8, 128], strides = [1, 1, 1]} : vector<5x9x128xbf16> to vector<4x8x128xbf16>
    %20 = vector.shape_cast %19 : vector<4x8x128xbf16> to vector<32x128xbf16>
    %21 = vector.extract_strided_slice %12 {offsets = [0, 0, 0], sizes = [4, 8, 128], strides = [1, 1, 1]} : vector<5x9x128xbf16> to vector<4x8x128xbf16>
    %22 = vector.shape_cast %21 : vector<4x8x128xbf16> to vector<32x128xbf16>
    %23 = vector.extract_strided_slice %9 {offsets = [0, 1, 0], sizes = [4, 8, 128], strides = [1, 1, 1]} : vector<5x9x128xbf16> to vector<4x8x128xbf16>
    %24 = vector.shape_cast %23 : vector<4x8x128xbf16> to vector<32x128xbf16>
    %25 = vector.extract_strided_slice %3 {offsets = [1, 0, 0], sizes = [4, 8, 128], strides = [1, 1, 1]} : vector<5x9x128xbf16> to vector<4x8x128xbf16>
    %26 = vector.shape_cast %25 : vector<4x8x128xbf16> to vector<32x128xbf16>
    %27 = vector.extract_strided_slice %6 {offsets = [1, 0, 0], sizes = [4, 8, 128], strides = [1, 1, 1]} : vector<5x9x128xbf16> to vector<4x8x128xbf16>
    %28 = vector.shape_cast %27 : vector<4x8x128xbf16> to vector<32x128xbf16>
    %29 = vector.extract_strided_slice %3 {offsets = [1, 1, 0], sizes = [4, 8, 128], strides = [1, 1, 1]} : vector<5x9x128xbf16> to vector<4x8x128xbf16>
    %30 = vector.shape_cast %29 : vector<4x8x128xbf16> to vector<32x128xbf16>
    %31 = tpu.concatenate %14, %16, %18, %20, %22, %24, %26, %28, %30 in 1 : vector<32x128xbf16>, vector<32x128xbf16>, vector<32x128xbf16>, vector<32x128xbf16>, vector<32x128xbf16>, vector<32x128xbf16>, vector<32x128xbf16>, vector<32x128xbf16>, vector<32x128xbf16> -> vector<32x1152xbf16>
    %c0_12 = arith.constant 0 : index
    %c0_13 = arith.constant 0 : index
    %32 = vector.load %arg4[%c0_12, %c0_13] : memref<1152x128xbf16, #tpu.memory_space<vmem>>, vector<1152x128xbf16>
    %cst = arith.constant dense<0.000000e+00> : vector<32x128xf32>
    %33 = tpu.matmul %31, %32, %cst {dimension_numbers = #tpu.dot_dimension_numbers<[1], [0], [0], [1], [0, 0, 1, 1], [], []>} : vector<32x1152xbf16>, vector<1152x128xbf16>, vector<32x128xf32> -> vector<32x128xf32>
    %c0_14 = arith.constant 0 : index
    %c0_15 = arith.constant 0 : index
    %34 = vector.load %arg5[%c0_14, %c0_15] : memref<1x128xf32, #tpu.memory_space<vmem>>, vector<1x128xf32>
    %35 = vector.broadcast %34 : vector<1x128xf32> to vector<32x128xf32>
    %36 = arith.addf %33, %35 : vector<32x128xf32>
    %cst_16 = arith.constant 0.000000e+00 : f32
    %37 = vector.broadcast %cst_16 : f32 to vector<32x128xf32>
    %38 = arith.maximumf %36, %37 : vector<32x128xf32>
    %39 = vector.shape_cast %38 : vector<32x128xf32> to vector<1x32x128xf32>
    %40 = arith.truncf %39 : vector<1x32x128xf32> to vector<1x32x128xbf16>
    %c0_17 = arith.constant 0 : index
    %c0_18 = arith.constant 0 : index
    %c0_19 = arith.constant 0 : index
    %41 = vector.load %arg6[%c0_17, %c0_18, %c0_19] : memref<1x32x128xbf16, #tpu.memory_space<vmem>>, vector<1x32x128xbf16>
    tpu.vector_store %arg6[%c0_17, %c0_18, %c0_19], %40 {strides = array<i32>} : memref<1x32x128xbf16, #tpu.memory_space<vmem>>, vector<1x32x128xbf16>,
    return
  }
  func.func @transform_0(%arg0: i32, %arg1: i32, %arg2: i32) -> (i32, i32, i32, i32, i32) {
    %c0_i32 = arith.constant 0 : i32
    %c0_i32_0 = arith.constant 0 : i32
    %c0_i32_1 = arith.constant 0 : i32
    %c0_i32_2 = arith.constant 0 : i32
    %c0_i32_3 = arith.constant 0 : i32
    return %arg0, %c0_i32, %c0_i32_0, %c0_i32_1, %c0_i32_2 : i32, i32, i32, i32, i32
  }
  func.func @transform_1(%arg0: i32, %arg1: i32, %arg2: i32) -> (i32, i32) {
    %c0_i32 = arith.constant 0 : i32
    %c0_i32_0 = arith.constant 0 : i32
    return %c0_i32, %arg1 : i32, i32
  }
  func.func @transform_2(%arg0: i32, %arg1: i32, %arg2: i32) -> (i32, i32) {
    %c0_i32 = arith.constant 0 : i32
    %c0_i32_0 = arith.constant 0 : i32
    return %c0_i32, %arg1 : i32, i32
  }
  func.func @transform_3(%arg0: i32, %arg1: i32, %arg2: i32) -> (i32, i32, i32) {
    %c0_i32 = arith.constant 0 : i32
    return %arg0, %arg2, %arg1 : i32, i32, i32
  }
}

module attributes {stable_mosaic.version = 11 : i64} {
  func.func @_mm_bias_proj_add_relu_kernel(%arg0: i32, %arg1: i32, %arg2: memref<128x128xbf16, #tpu.memory_space<vmem>>, %arg3: memref<128x128xbf16, #tpu.memory_space<vmem>>, %arg4: memref<1x128xf32, #tpu.memory_space<vmem>>, %arg5: memref<128x16xbf16, #tpu.memory_space<vmem>>, %arg6: memref<16x128xbf16, #tpu.memory_space<vmem>>, %arg7: memref<1x128xf32, #tpu.memory_space<vmem>>, %arg8: memref<128x128xbf16, #tpu.memory_space<vmem>>) attributes {dimension_semantics = [#tpu.dimension_semantics<parallel>, #tpu.dimension_semantics<parallel>], iteration_bounds = array<i64: 1, 1>, scalar_prefetch = 0 : i64, scratch_operands = 0 : i64, tpu.core_type = #tpu.core_type<tc>, window_params = [{transform_indices = @transform_0, window_bounds = array<i64: 128, 128>}, {transform_indices = @transform_1, window_bounds = array<i64: 128, 128>}, {transform_indices = @transform_2, window_bounds = array<i64: 1, 128>}, {transform_indices = @transform_3, window_bounds = array<i64: 128, 16>}, {transform_indices = @transform_4, window_bounds = array<i64: 16, 128>}, {transform_indices = @transform_5, window_bounds = array<i64: 1, 128>}, {transform_indices = @transform_6, window_bounds = array<i64: 128, 128>}]} {
    %c0 = arith.constant 0 : index
    %c0_0 = arith.constant 0 : index
    %0 = vector.load %arg2[%c0, %c0_0] : memref<128x128xbf16, #tpu.memory_space<vmem>>, vector<128x128xbf16>
    %c0_1 = arith.constant 0 : index
    %c0_2 = arith.constant 0 : index
    %1 = vector.load %arg3[%c0_1, %c0_2] : memref<128x128xbf16, #tpu.memory_space<vmem>>, vector<128x128xbf16>
    %cst = arith.constant dense<0.000000e+00> : vector<128x128xf32>
    %2 = tpu.matmul %0, %1, %cst {dimension_numbers = #tpu.dot_dimension_numbers<[1], [0], [0], [1], [0, 0, 1, 1], [], []>} : vector<128x128xbf16>, vector<128x128xbf16>, vector<128x128xf32> -> vector<128x128xf32>
    %c0_3 = arith.constant 0 : index
    %c0_4 = arith.constant 0 : index
    %3 = vector.load %arg4[%c0_3, %c0_4] : memref<1x128xf32, #tpu.memory_space<vmem>>, vector<1x128xf32>
    %4 = vector.broadcast %3 : vector<1x128xf32> to vector<128x128xf32>
    %5 = arith.addf %2, %4 : vector<128x128xf32>
    %c0_5 = arith.constant 0 : index
    %c0_6 = arith.constant 0 : index
    %6 = vector.load %arg5[%c0_5, %c0_6] : memref<128x16xbf16, #tpu.memory_space<vmem>>, vector<128x16xbf16>
    %c0_7 = arith.constant 0 : index
    %c0_8 = arith.constant 0 : index
    %7 = vector.load %arg6[%c0_7, %c0_8] : memref<16x128xbf16, #tpu.memory_space<vmem>>, vector<16x128xbf16>
    %cst_9 = arith.constant dense<0.000000e+00> : vector<128x128xf32>
    %8 = tpu.matmul %6, %7, %cst_9 {dimension_numbers = #tpu.dot_dimension_numbers<[1], [0], [0], [1], [0, 0, 1, 1], [], []>} : vector<128x16xbf16>, vector<16x128xbf16>, vector<128x128xf32> -> vector<128x128xf32>
    %c0_10 = arith.constant 0 : index
    %c0_11 = arith.constant 0 : index
    %9 = vector.load %arg7[%c0_10, %c0_11] : memref<1x128xf32, #tpu.memory_space<vmem>>, vector<1x128xf32>
    %10 = vector.broadcast %9 : vector<1x128xf32> to vector<128x128xf32>
    %11 = arith.addf %8, %10 : vector<128x128xf32>
    %12 = arith.addf %5, %11 : vector<128x128xf32>
    %cst_12 = arith.constant 0.000000e+00 : f32
    %13 = vector.broadcast %cst_12 : f32 to vector<128x128xf32>
    %14 = arith.maximumf %12, %13 : vector<128x128xf32>
    %15 = arith.truncf %14 : vector<128x128xf32> to vector<128x128xbf16>
    %c0_13 = arith.constant 0 : index
    %c0_14 = arith.constant 0 : index
    %16 = vector.load %arg8[%c0_13, %c0_14] : memref<128x128xbf16, #tpu.memory_space<vmem>>, vector<128x128xbf16>
    tpu.vector_store %arg8[%c0_13, %c0_14], %15 {strides = array<i32>} : memref<128x128xbf16, #tpu.memory_space<vmem>>, vector<128x128xbf16>,
    return
  }
  func.func @transform_0(%arg0: i32, %arg1: i32) -> (i32, i32) {
    %c0_i32 = arith.constant 0 : i32
    %c0_i32_0 = arith.constant 0 : i32
    return %arg0, %c0_i32 : i32, i32
  }
  func.func @transform_1(%arg0: i32, %arg1: i32) -> (i32, i32) {
    %c0_i32 = arith.constant 0 : i32
    %c0_i32_0 = arith.constant 0 : i32
    return %c0_i32, %arg1 : i32, i32
  }
  func.func @transform_2(%arg0: i32, %arg1: i32) -> (i32, i32) {
    %c0_i32 = arith.constant 0 : i32
    %c0_i32_0 = arith.constant 0 : i32
    return %c0_i32, %arg1 : i32, i32
  }
  func.func @transform_3(%arg0: i32, %arg1: i32) -> (i32, i32) {
    %c0_i32 = arith.constant 0 : i32
    %c0_i32_0 = arith.constant 0 : i32
    return %arg0, %c0_i32 : i32, i32
  }
  func.func @transform_4(%arg0: i32, %arg1: i32) -> (i32, i32) {
    %c0_i32 = arith.constant 0 : i32
    %c0_i32_0 = arith.constant 0 : i32
    return %c0_i32, %arg1 : i32, i32
  }
  func.func @transform_5(%arg0: i32, %arg1: i32) -> (i32, i32) {
    %c0_i32 = arith.constant 0 : i32
    %c0_i32_0 = arith.constant 0 : i32
    return %c0_i32, %arg1 : i32, i32
  }
  func.func @transform_6(%arg0: i32, %arg1: i32) -> (i32, i32) {
    %c0_i32 = arith.constant 0 : i32
    return %arg0, %arg1 : i32, i32
  }
}

</mosaic_0001>

<bundles_post_ra>
// kernel: bottleneck_forward.3
= control target key start
LH: loop header
LB: loop body
LE: loop exit
PB: predicated region body
PF: predicated region fallthrough
CT: control target
= control target key end

     0   :  { %s967_s12 = smov 0   ;;  %s969_s13 = smov 0   ;;  %s1081_s0 = inlined_call_operand.vmem [shape: bf16[512,16], index: 0, kind: input, shape index: {}]   ;;  %s1082_s1 = inlined_call_operand.vmem [shape: bf16[16,128], index: 1, kind: input, shape index: {}]   ;;  %s1083_s2 = inlined_call_operand.vmem [shape: f32[1,128], index: 2, kind: input, shape index: {}]   ;;  %s1084_s3 = inlined_call_operand.vmem [shape: bf16[512,128], index: 3, kind: output, shape index: {}]  }
   0x1   :  { %s971_s14 = smov 0  }
   0x2 LB: > { %s25_s15 = sadd.s32 1, %s941_s13  ;;  %p692_p0 = scmp.ge.s32.totalorder %s945_s14, 1  ;;  %s945_s14 = sphi %s971_s14, %s13_s14   ;;  %s941_s13 = sphi %s969_s13, %s1086_s13   ;;  %s937_s12 = sphi %s967_s12, %s1085_s12  }
   0x3   : > { %p27_p1 = scmp.ge.s32.totalorder %s25_s15, 2  ;;  %p169_p2 = scmp.lt.s32.totalorder %s945_s14, 3 }
   0x5   : > { %s1088_s15 = smov (%p27_p1, %s25_s15), 0  ;;  %p170_p3 = pnand %p692_p0, %p169_p2 }
   0x6   : > { %s693_s18 = sshll.u32 (!%p170_p3), %s937_s12, 5 }
   0x7   : > { %173 = sbr.rel (%p170_p3) target bundleno = 214 (0xd6), region = 32  ;;  %p204_p4 = scmp.lt.s32.totalorder (!%p170_p3), %s693_s18, 63 }
   0xc   : > { %v799_v0 = vld [vmem:[%s1082_s1] sm:$0xff]  ;;  %s1090_s18 = smov (!%p204_p4, %s693_s18), 63  ;;  %vm350_vm0 = vcmask 130048  }
   0xd   : > { %406 = vmatpush.bf16.msra.mxu0 %v799_v0  ;;  %895 = vmatpush.bf16.msra.mxu1 %v799_v0  ;;  %s694_s19 = sshll.u32 %s1090_s18, 2  ;;  %v1015_v19 = vld [vmem:[%s1083_s2] ss:$0 sm:$0xff] }
   0xe   : > { %896 = vmatpush.bf16.msra.mxu2 %v799_v0  ;;  %897 = vmatpush.bf16.msra.mxu3 %v799_v0  ;;  %s207_s22 = scalar_lea.vmem %s1081_s0, %s694_s19  ;;  %s1026_s27 = scalar_lea.vmem %s1084_s3, %s694_s19 }
   0xf   : > { %v783_v1 = vld [vmem:[%s207_s22] sm:$0xff]  ;;  %v784_v5 = vld [vmem:[%s207_s22 + $0x8] sm:$0xff]  ;;  %v785_v9 = vld [vmem:[%s207_s22 + $0x10] sm:$0xff] }
  0x10   : > { %v787_v2 = vld [vmem:[%s207_s22 + $0x20] sm:$0xff]  ;;  %765 = vmatmul.msk.bf16.vlgmr.msra.gmra.mxu0 %vm350_vm0, %v783_v1  ;;  %v788_v6 = vld [vmem:[%s207_s22 + $0x28] sm:$0xff]  ;;  %v789_v10 = vld [vmem:[%s207_s22 + $0x30] sm:$0xff] }
  0x11   : > { %v791_v3 = vld [vmem:[%s207_s22 + $0x40] sm:$0xff]  ;;  %769 = vmatmul.msk.bf16.vlgmr.msra.gmra.mxu1 %vm350_vm0, %v787_v2  ;;  %v792_v7 = vld [vmem:[%s207_s22 + $0x48] sm:$0xff]  ;;  %v793_v11 = vld [vmem:[%s207_s22 + $0x50] sm:$0xff] }
  0x12   : > { %v795_v4 = vld [vmem:[%s207_s22 + $0x60] sm:$0xff]  ;;  %773 = vmatmul.msk.bf16.vlgmr.msra.gmra.mxu2 %vm350_vm0, %v791_v3  ;;  %v796_v8 = vld [vmem:[%s207_s22 + $0x68] sm:$0xff]  ;;  %v797_v12 = vld [vmem:[%s207_s22 + $0x70] sm:$0xff] }
  0x13   : > { %777 = vmatmul.msk.bf16.vlgmr.msra.gmra.mxu3 %vm350_vm0, %v795_v4  ;;  %v786_v13 = vld [vmem:[%s207_s22 + $0x18] sm:$0xff] }
  0x14   : > { %v790_v14 = vld [vmem:[%s207_s22 + $0x38] sm:$0xff] }
  0x15   : > { %v794_v15 = vld [vmem:[%s207_s22 + $0x58] sm:$0xff] }
  0x16   : > { %v798_v16 = vld [vmem:[%s207_s22 + $0x78] sm:$0xff] }
  0x20   : > { %766 = vmatmul.msk.bf16.gmra.mxu0 %vm350_vm0, %v784_v5 }
  0x21   : > { %770 = vmatmul.msk.bf16.gmra.mxu1 %vm350_vm0, %v788_v6 }
  0x22   : > { %774 = vmatmul.msk.bf16.gmra.mxu2 %vm350_vm0, %v792_v7 }
  0x23   : > { %778 = vmatmul.msk.bf16.gmra.mxu3 %vm350_vm0, %v796_v8 }
  0x30   : > { %767 = vmatmul.msk.bf16.gmra.mxu0 %vm350_vm0, %v785_v9 }
  0x31   : > { %771 = vmatmul.msk.bf16.gmra.mxu1 %vm350_vm0, %v789_v10 }
  0x32   : > { %775 = vmatmul.msk.bf16.gmra.mxu2 %vm350_vm0, %v793_v11 }
  0x33   : > { %779 = vmatmul.msk.bf16.gmra.mxu3 %vm350_vm0, %v797_v12 }
  0x40   : > { %768 = vmatmul.msk.bf16.gmra.mxu0 %vm350_vm0, %v786_v13 }
  0x41   : > { %772 = vmatmul.msk.bf16.gmra.mxu1 %vm350_vm0, %v790_v14 }
  0x42   : > { %776 = vmatmul.msk.bf16.gmra.mxu2 %vm350_vm0, %v794_v15 }
  0x43   : > { %780 = vmatmul.msk.bf16.gmra.mxu3 %vm350_vm0, %v798_v16 }
  0x8d   : > { %v408_v17 = vpop.f32.mrf.mxu0 }
  0x8e   : > { %v428_v18 = vpop.f32.mrf.mxu1  ;;  %v409_v20 = vadd.f32 %v1015_v19, %v408_v17 }
  0x8f   : > { %v429_v21 = vadd.f32 %v1015_v19, %v428_v18 }
  0x90   : > { %v488_v28 = vmax.f32 %v409_v20, 0.0 }
  0x91   : > { %v496_v29 = vmax.f32 %v429_v21, 0.0 }
  0x95   : > { %v448_v22 = vpop.f32.mrf.mxu2  ;;  %v410_v24 = vpop.f32.mrf.mxu0 }
  0x96   : > { %v468_v23 = vpop.f32.mrf.mxu3  ;;  %v430_v25 = vpop.f32.mrf.mxu1  ;;  %v411_v26 = vadd.f32 %v1015_v19, %v410_v24  ;;  %v449_v34 = vadd.f32 %v1015_v19, %v448_v22 }
  0x97   : > { %v431_v27 = vadd.f32 %v1015_v19, %v430_v25  ;;  %v469_v35 = vadd.f32 %v1015_v19, %v468_v23 }
  0x98   : > { %v489_v30 = vmax.f32 %v411_v26, 0.0  ;;  %v504_v42 = vmax.f32 %v449_v34, 0.0 }
  0x99   : > { %v497_v31 = vmax.f32 %v431_v27, 0.0  ;;  %v512_v43 = vmax.f32 %v469_v35, 0.0 }
  0x9a   : > { %v803_v32 = vpack.c.bf16 %v489_v30, %v488_v28 }
  0x9b   : > { %v823_v33 = vpack.c.bf16 %v497_v31, %v496_v29 }
  0x9c   : > { %804 = vst [vmem:[%s1026_s27] sm:$0xff] %v803_v32  }
  0x9d   : > { %v450_v36 = vpop.f32.mrf.mxu2  ;;  %883 = vst [vmem:[%s1026_s27 + $0x20] sm:$0xff] %v823_v33   ;;  %v413_v40 = vpop.f32.mrf.mxu0 }
  0x9e   : > { %v470_v37 = vpop.f32.mrf.mxu3  ;;  %v451_v38 = vadd.f32 %v1015_v19, %v450_v36  ;;  %v433_v41 = vpop.f32.mrf.mxu1  ;;  %v414_v48 = vadd.f32 %v1015_v19, %v413_v40 }
  0x9f   : > { %v471_v39 = vadd.f32 %v1015_v19, %v470_v37  ;;  %v434_v49 = vadd.f32 %v1015_v19, %v433_v41 }
  0xa0   : > { %v505_v44 = vmax.f32 %v451_v38, 0.0  ;;  %v490_v56 = vmax.f32 %v414_v48, 0.0 }
  0xa1   : > { %v513_v45 = vmax.f32 %v471_v39, 0.0  ;;  %v498_v57 = vmax.f32 %v434_v49, 0.0 }
  0xa2   : > { %v843_v46 = vpack.c.bf16 %v505_v44, %v504_v42 }
  0xa3   : > { %v863_v47 = vpack.c.bf16 %v513_v45, %v512_v43 }
  0xa4   : > { %887 = vst [vmem:[%s1026_s27 + $0x40] sm:$0xff] %v843_v46  }
  0xa5   : > { %891 = vst [vmem:[%s1026_s27 + $0x60] sm:$0xff] %v863_v47   ;;  %v453_v50 = vpop.f32.mrf.mxu2  ;;  %v415_v52 = vpop.f32.mrf.mxu0 }
  0xa6   : > { %v473_v51 = vpop.f32.mrf.mxu3  ;;  %v435_v53 = vpop.f32.mrf.mxu1  ;;  %v416_v54 = vadd.f32 %v1015_v19, %v415_v52  ;;  %v454_v62 = vadd.f32 %v1015_v19, %v453_v50 }
  0xa7   : > { %v436_v55 = vadd.f32 %v1015_v19, %v435_v53  ;;  %v474_v63 = vadd.f32 %v1015_v19, %v473_v51 }
  0xa8   : > { %v491_v58 = vmax.f32 %v416_v54, 0.0  ;;  %v506_v6 = vmax.f32 %v454_v62, 0.0 }
  0xa9   : > { %v499_v59 = vmax.f32 %v436_v55, 0.0  ;;  %v514_v7 = vmax.f32 %v474_v63, 0.0 }
  0xaa   : > { %v808_v60 = vpack.c.bf16 %v491_v58, %v490_v56 }
  0xab   : > { %v828_v61 = vpack.c.bf16 %v499_v59, %v498_v57 }
  0xac   : > { %880 = vst [vmem:[%s1026_s27 + $0x8] sm:$0xff] %v808_v60  }
  0xad   : > { %v455_v0 = vpop.f32.mrf.mxu2  ;;  %884 = vst [vmem:[%s1026_s27 + $0x28] sm:$0xff] %v828_v61   ;;  %v418_v4 = vpop.f32.mrf.mxu0 }
  0xae   : > { %v475_v1 = vpop.f32.mrf.mxu3  ;;  %v456_v2 = vadd.f32 %v1015_v19, %v455_v0  ;;  %v438_v5 = vpop.f32.mrf.mxu1  ;;  %v419_v12 = vadd.f32 %v1015_v19, %v418_v4 }
  0xaf   : > { %v476_v3 = vadd.f32 %v1015_v19, %v475_v1  ;;  %v439_v13 = vadd.f32 %v1015_v19, %v438_v5 }
  0xb0   : > { %v507_v8 = vmax.f32 %v456_v2, 0.0  ;;  %v492_v21 = vmax.f32 %v419_v12, 0.0 }
  0xb1   : > { %v515_v9 = vmax.f32 %v476_v3, 0.0  ;;  %v500_v22 = vmax.f32 %v439_v13, 0.0 }
  0xb2   : > { %v848_v10 = vpack.c.bf16 %v507_v8, %v506_v6 }
  0xb3   : > { %v868_v11 = vpack.c.bf16 %v515_v9, %v514_v7 }
  0xb4   : > { %888 = vst [vmem:[%s1026_s27 + $0x48] sm:$0xff] %v848_v10  }
  0xb5   : > { %892 = vst [vmem:[%s1026_s27 + $0x68] sm:$0xff] %v868_v11   ;;  %v458_v14 = vpop.f32.mrf.mxu2  ;;  %v420_v16 = vpop.f32.mrf.mxu0 }
  0xb6   : > { %v478_v15 = vpop.f32.mrf.mxu3  ;;  %v440_v17 = vpop.f32.mrf.mxu1  ;;  %v421_v18 = vadd.f32 %v1015_v19, %v420_v16  ;;  %v459_v27 = vadd.f32 %v1015_v19, %v458_v14 }
  0xb7   : > { %v441_v20 = vadd.f32 %v1015_v19, %v440_v17  ;;  %v479_v28 = vadd.f32 %v1015_v19, %v478_v15 }
  0xb8   : > { %v493_v23 = vmax.f32 %v421_v18, 0.0  ;;  %v508_v35 = vmax.f32 %v459_v27, 0.0 }
  0xb9   : > { %v501_v24 = vmax.f32 %v441_v20, 0.0  ;;  %v516_v36 = vmax.f32 %v479_v28, 0.0 }
  0xba   : > { %v813_v25 = vpack.c.bf16 %v493_v23, %v492_v21 }
  0xbb   : > { %v833_v26 = vpack.c.bf16 %v501_v24, %v500_v22 }
  0xbc   : > { %881 = vst [vmem:[%s1026_s27 + $0x10] sm:$0xff] %v813_v25  }
  0xbd   : > { %v460_v29 = vpop.f32.mrf.mxu2  ;;  %885 = vst [vmem:[%s1026_s27 + $0x30] sm:$0xff] %v833_v26   ;;  %v423_v33 = vpop.f32.mrf.mxu0 }
  0xbe   : > { %v480_v30 = vpop.f32.mrf.mxu3  ;;  %v461_v31 = vadd.f32 %v1015_v19, %v460_v29  ;;  %v443_v34 = vpop.f32.mrf.mxu1  ;;  %v424_v41 = vadd.f32 %v1015_v19, %v423_v33 }
  0xbf   : > { %v481_v32 = vadd.f32 %v1015_v19, %v480_v30  ;;  %v444_v42 = vadd.f32 %v1015_v19, %v443_v34 }
  0xc0   : > { %v509_v37 = vmax.f32 %v461_v31, 0.0  ;;  %v494_v49 = vmax.f32 %v424_v41, 0.0 }
  0xc1   : > { %v517_v38 = vmax.f32 %v481_v32, 0.0  ;;  %v502_v50 = vmax.f32 %v444_v42, 0.0 }
  0xc2   : > { %v853_v39 = vpack.c.bf16 %v509_v37, %v508_v35 }
  0xc3   : > { %v873_v40 = vpack.c.bf16 %v517_v38, %v516_v36 }
  0xc4   : > { %889 = vst [vmem:[%s1026_s27 + $0x50] sm:$0xff] %v853_v39  }
  0xc5   : > { %893 = vst [vmem:[%s1026_s27 + $0x70] sm:$0xff] %v873_v40   ;;  %v463_v43 = vpop.f32.mrf.mxu2  ;;  %v425_v45 = vpop.f32.mrf.mxu0 }
  0xc6   : > { %v483_v44 = vpop.f32.mrf.mxu3  ;;  %v445_v46 = vpop.f32.mrf.mxu1  ;;  %v426_v47 = vadd.f32 %v1015_v19, %v425_v45  ;;  %v464_v55 = vadd.f32 %v1015_v19, %v463_v43 }
  0xc7   : > { %v446_v48 = vadd.f32 %v1015_v19, %v445_v46  ;;  %v484_v56 = vadd.f32 %v1015_v19, %v483_v44 }
  0xc8   : > { %v495_v51 = vmax.f32 %v426_v47, 0.0  ;;  %v510_v61 = vmax.f32 %v464_v55, 0.0 }
  0xc9   : > { %v503_v52 = vmax.f32 %v446_v48, 0.0  ;;  %v518_v62 = vmax.f32 %v484_v56, 0.0 }
  0xca   : > { %v818_v53 = vpack.c.bf16 %v495_v51, %v494_v49 }
  0xcb   : > { %v838_v54 = vpack.c.bf16 %v503_v52, %v502_v50 }
  0xcc   : > { %882 = vst [vmem:[%s1026_s27 + $0x18] sm:$0xff] %v818_v53  }
  0xcd   : > { %v465_v57 = vpop.f32.mrf.mxu2  ;;  %886 = vst [vmem:[%s1026_s27 + $0x38] sm:$0xff] %v838_v54  }
  0xce   : > { %v485_v58 = vpop.f32.mrf.mxu3  ;;  %v466_v59 = vadd.f32 %v1015_v19, %v465_v57 }
  0xcf   : > { %v486_v60 = vadd.f32 %v1015_v19, %v485_v58 }
  0xd0   : > { %v511_v63 = vmax.f32 %v466_v59, 0.0 }
  0xd1   : > { %v519_v0 = vmax.f32 %v486_v60, 0.0 }
  0xd2   : > { %v858_v1 = vpack.c.bf16 %v511_v63, %v510_v61 }
  0xd3   : > { %v878_v2 = vpack.c.bf16 %v519_v0, %v518_v62 }
  0xd4   : > { %890 = vst [vmem:[%s1026_s27 + $0x58] sm:$0xff] %v858_v1  }
  0xd5   : > { %894 = vst [vmem:[%s1026_s27 + $0x78] sm:$0xff] %v878_v2  }
  0xd6 PF: > { %s13_s14 = sadd.s32 1, %s945_s14   ;;  %s1085_s12 = smov %s941_s13 }
  0xd7   : > { %p10_p5 = scmp.ge.s32.totalorder %s13_s14, 4   ;;  %s1086_s13 = smov %s1088_s15 }
  0xd9   :  { %12 = sbr.rel (!%p10_p5) target bundleno = 2 (0x2), region = 68 }

// kernel: bottleneck_forward.4
= control target key start
LH: loop header
LB: loop body
LE: loop exit
PB: predicated region body
PF: predicated region fallthrough
CT: control target
= control target key end

     0   :  { %s1936_s12 = smov 0   ;;  %s1938_s13 = smov 0   ;;  %s2334_s0 = inlined_call_operand.vmem [shape: bf16[2,4,9,9,128], index: 0, kind: input, shape index: {}]   ;;  %s2335_s1 = inlined_call_operand.vmem [shape: bf16[1152,128], index: 1, kind: input, shape index: {}]   ;;  %s2336_s2 = inlined_call_operand.vmem [shape: f32[1,128], index: 2, kind: input, shape index: {}]   ;;  %s2337_s3 = inlined_call_operand.vmem [shape: bf16[2,64,128], index: 3, kind: output, shape index: {}]  }
   0x1   :  { %s1940_s14 = smov 0   ;;  %s1942_s15 = smov 0  }
   0x2   :  { %s1944_s16 = smov 0  }
   0x3 LB: > { %s25_s17 = sadd.s32 1, %s1906_s14  ;;  %s32_s18 = sadd.s32 1, %s1910_s15  ;;  %s1914_s16 = sphi %s1944_s16, %s13_s16   ;;  %s1910_s15 = sphi %s1942_s15, %s2343_s15   ;;  %s1906_s14 = sphi %s1940_s14, %s2342_s14   ;;  %s1902_s13 = sphi %s1938_s13, %s2341_s13   ;;  %s1898_s12 = sphi %s1936_s12, %s2340_s12  }
   0x4   : > { %p26_p0 = scmp.ge.s32.totalorder %s25_s17, 2  ;;  %p1397_p1 = scmp.ge.s32.totalorder %s1914_s16, 1 }
   0x5   : > { %p177_p2 = scmp.lt.s32.totalorder %s1914_s16, 5 }
   0x6   : > { %s2345_s17 = smov (%p26_p0, %s25_s17), 0  ;;  %s2347_s18 = smov (!%p26_p0, %s32_s18), %s1910_s15 }
   0x7   : > { %p178_p3 = pnand %p1397_p1, %p177_p2  ;;  %p34_p4 = scmp.ge.s32.totalorder %s2347_s18, 2 }
   0x8   : > { %p215_p5 = scmp.lt.s32.totalorder (!%p178_p3), %s1902_s13, 1  ;;  %s1735_s9 = sshll.u32 (!%p178_p3), %s1898_s12, 5 }
   0x9   : > { %s2349_s18 = smov (%p34_p4, %s2347_s18), 0  ;;  %181 = sbr.rel (%p178_p3) target bundleno = 252 (0xfc), region = 32 }
   0xe   : > { %v1750_v0 = vld [vmem:[%s2335_s1 + $0x38] sm:$0xff]  ;;  %v1749_v4 = vld [vmem:[%s2335_s1 + $0x30] sm:$0xff]  ;;  %s2351_s13 = smov (!%p215_p5, %s1902_s13), 1  ;;  %v1748_v8 = vld [vmem:[%s2335_s1 + $0x28] sm:$0xff]  ;;  %vm280_vm0 = vsmask.f32 3328 }
   0xf   : > { %v1758_v1 = vld [vmem:[%s2335_s1 + $0x78] sm:$0xff]  ;;  %1070 = vmatpush.bf16.msra.mxu0 %v1750_v0  ;;  %v1757_v5 = vld [vmem:[%s2335_s1 + $0x70] sm:$0xff]  ;;  %s1834_s8 = smul.u32 288, %s2351_s13  ;;  %v1756_v9 = vld [vmem:[%s2335_s1 + $0x68] sm:$0xff]  ;;  %vm281_vm1 = vsmask.f32 7440 }
  0x10   : > { %v1766_v2 = vld [vmem:[%s2335_s1 + $0xb8] sm:$0xff]  ;;  %1089 = vmatpush.bf16.msra.mxu1 %v1758_v1  ;;  %v1765_v6 = vld [vmem:[%s2335_s1 + $0xb0] sm:$0xff]  ;;  %v1764_v10 = vld [vmem:[%s2335_s1 + $0xa8] sm:$0xff]  ;;  %s1400_s10 = sshll.u32 %s2351_s13, 3 }
  0x11   : > { %v1774_v3 = vld [vmem:[%s2335_s1 + $0xf8] sm:$0xff]  ;;  %1108 = vmatpush.bf16.msra.mxu2 %v1766_v2  ;;  %v1773_v7 = vld [vmem:[%s2335_s1 + $0xf0] sm:$0xff]  ;;  %s219_s23 = scalar_lea.vmem %s2334_s0, %s1834_s8  ;;  %v1772_v11 = vld [vmem:[%s2335_s1 + $0xe8] sm:$0xff] }
  0x12   : > { %1127 = vmatpush.bf16.msra.mxu3 %v1774_v3  ;;  %s2011_s28 = scalar_lea.vmem %s219_s23, %s1735_s9  ;;  %v1747_v12 = vld [vmem:[%s2335_s1 + $0x20] sm:$0xff]  ;;  %v1746_v26 = vld [vmem:[%s2335_s1 + $0x18] sm:$0xff]  ;;  %v1745_v36 = vld [vmem:[%s2335_s1 + $0x10] sm:$0xff]  ;;  %s1399_s9 = sshll.u32 %s1898_s12, 2 }
  0x13   : > { %1071 = vmatpush.bf16.msra.mxu0 %v1749_v4  ;;  %v1755_v13 = vld [vmem:[%s2335_s1 + $0x60] sm:$0xff]  ;;  %v2029_v17 = vld [vmem:[%s2011_s28 + $0x8] sm:$0xf]  ;;  %v247_v25 = vld [vmem:[%s2011_s28 + $0xc] sm:$0x1]  ;;  %p230_p6 = scmp.lt.s32.totalorder %s1399_s9, 7 }
  0x14   : > { %1090 = vmatpush.bf16.msra.mxu1 %v1757_v5  ;;  %v2020_v14 = vld [vmem:[%s2011_s28] sm:$0xf]  ;;  %v298_v20 = vshrl.u32 %v2029_v17, 16  ;;  %v301_v21 = vshll.u32 %v2029_v17, 16  ;;  %v245_v22 = vld [vmem:[%s2011_s28 + $0x4] sm:$0x1]  ;;  %vm2062_vm2 = vmor %vm280_vm0, %vm281_vm1  ;;  %v414_v60 = vunpack.c.l.b16 %v2029_v17 }
  0x15   : > { %1109 = vmatpush.bf16.msra.mxu2 %v1765_v6  ;;  %v1763_v15 = vld [vmem:[%s2335_s1 + $0xa0] sm:$0xff]  ;;  %v284_v18 = vshrl.u32 %v2020_v14, 16  ;;  %v287_v19 = vshll.u32 %v2020_v14, 16  ;;  %v1754_v27 = vld [vmem:[%s2335_s1 + $0x58] sm:$0xff]  ;;  %v293_v33 = vshll.u32 %v245_v22, 16  ;;  %v307_v34 = vshll.u32 %v247_v25, 16 }
  0x16   : > { %1128 = vmatpush.bf16.msra.mxu3 %v1773_v7  ;;  %v1771_v16 = vld [vmem:[%s2335_s1 + $0xe0] sm:$0xff]  ;;  %v300_v28 = vrot.slane %v298_v20, 4  ;;  %v303_v29 = vrot.slane %v301_v21, 5  ;;  %v1762_v30 = vld [vmem:[%s2335_s1 + $0x98] sm:$0xff]  ;;  %v1753_v37 = vld [vmem:[%s2335_s1 + $0x50] sm:$0xff]  ;;  %v413_v59 = vunpack.c.l.b16 %v2020_v14  ;;  %s2353_s9 = smov (!%p230_p6, %s1399_s9), 7 }
  0x17   : > { %1072 = vmatpush.bf16.msra.mxu0 %v1748_v8  ;;  %v286_v23 = vrot.slane %v284_v18, 4  ;;  %v289_v24 = vrot.slane %v287_v19, 5  ;;  %v1770_v31 = vld [vmem:[%s2335_s1 + $0xd8] sm:$0xff]  ;;  %v1761_v38 = vld [vmem:[%s2335_s1 + $0x90] sm:$0xff]  ;;  %v1407_v40 = vld [vmem:[%s2011_s28 + $0x48] sm:$0xf]  ;;  %s236_s12 = sadd.s32 %s1400_s10, %s2353_s9 }
  0x18   : > { %1091 = vmatpush.bf16.msra.mxu1 %v1756_v9  ;;  %v304_v35 = vor.u32 %v303_v29, %v300_v28  ;;  %v1769_v39 = vld [vmem:[%s2335_s1 + $0xd0] sm:$0xff]  ;;  %v295_v42 = vrot.slane %v293_v33, 5  ;;  %v309_v44 = vrot.slane %v307_v34, 5  ;;  %v2070_v47 = vld [vmem:[%s2011_s28 + $0x18] sm:$0xf]  ;;  %v1744_v52 = vld [vmem:[%s2335_s1 + $0x8] sm:$0xff]  ;;  %v425_v61 = vunpack.c.l.b16 %v1407_v40 }
  0x19   : > { %1110 = vmatpush.bf16.msra.mxu2 %v1764_v10  ;;  %v290_v32 = vor.u32 %v289_v24, %v286_v23  ;;  %v2067_v46 = vld [vmem:[%s2011_s28 + $0x10] sm:$0xf]  ;;  %v326_v51 = vshrl.u32 %v2070_v47, 16  ;;  %v1752_v53 = vld [vmem:[%s2335_s1 + $0x48] sm:$0xff]  ;;  %v329_v54 = vshll.u32 %v2070_v47, 16  ;;  %v1743_v63 = vld [vmem:[%s2335_s1] sm:$0xff] }
  0x1a   : > { %1129 = vmatpush.bf16.msra.mxu3 %v1772_v11  ;;  %v305_v43 = vrot.slane %v304_v35, 4  ;;  %v2073_v48 = vld [vmem:[%s2011_s28 + $0x50] sm:$0xf]  ;;  %v312_v49 = vshrl.u32 %v2067_v46, 16  ;;  %v315_v50 = vshll.u32 %v2067_v46, 16  ;;  %v1760_v55 = vld [vmem:[%s2335_s1 + $0x88] sm:$0xff] }
  0x1b   : > { %1073 = vmatpush.bf16.msra.mxu0 %v1747_v12  ;;  %v291_v41 = vrot.slane %v290_v32, 4  ;;  %v1768_v56 = vld [vmem:[%s2335_s1 + $0xc8] sm:$0xff]  ;;  %v426_v62 = vunpack.c.l.b16 %v2073_v48  ;;  %v1751_v0 = vld [vmem:[%s2335_s1 + $0x40] sm:$0xff]  ;;  %v328_v3 = vrot.slane %v326_v51, 4  ;;  %v331_v4 = vrot.slane %v329_v54, 5  ;;  %v1798_v24 = vld [vmem:[%s2335_s1 + $0x1b8] sm:$0xff] }
  0x1c   : > { %1092 = vmatpush.bf16.msra.mxu1 %v1755_v13  ;;  %v310_v58 = vsel %vm2062_vm2, %v305_v43, %v309_v44  ;;  %v314_v1 = vrot.slane %v312_v49, 4  ;;  %v317_v2 = vrot.slane %v315_v50, 5  ;;  %v1759_v5 = vld [vmem:[%s2335_s1 + $0x80] sm:$0xff]  ;;  %v249_v8 = vld [vmem:[%s2011_s28 + $0x14] sm:$0x1]  ;;  %v417_v13 = vpack.c.b16 %v414_v60, %v413_v59  ;;  %v1806_v25 = vld [vmem:[%s2335_s1 + $0x1f8] sm:$0xff] }
  0x1d   : > { %1111 = vmatpush.bf16.msra.mxu2 %v1763_v15  ;;  %v296_v57 = vsel %vm2062_vm2, %v291_v41, %v295_v42  ;;  %v2107_v7 = vunpack.c.l.b16 %v310_v58  ;;  %v251_v9 = vld [vmem:[%s2011_s28 + $0x1c] sm:$0x1]  ;;  %v1767_v10 = vld [vmem:[%s2335_s1 + $0xc0] sm:$0xff]  ;;  %v1430_v11 = vld [vmem:[%s2011_s28 + $0x90] sm:$0xf]  ;;  %v429_v14 = vpack.c.b16 %v426_v62, %v425_v61  ;;  %v321_v19 = vshll.u32 %v249_v8, 16 }
  0x1e   : > { %1130 = vmatpush.bf16.msra.mxu3 %v1771_v16  ;;  %v433_v6 = vunpack.c.l.b16 %v296_v57  ;;  %v1738_v12 = vld [vmem:[%s2011_s28 + $0x94] sm:$0xf0]  ;;  %v318_v18 = vor.u32 %v317_v2, %v314_v1  ;;  %v332_v20 = vor.u32 %v331_v4, %v328_v3  ;;  %v335_v21 = vshll.u32 %v251_v9, 16  ;;  %v1797_v32 = vld [vmem:[%s2335_s1 + $0x1b0] sm:$0xff]  ;;  %v2161_v41 = vld [vmem:[%s2011_s28 + $0x60] sm:$0xf] }
  0x1f   : > { %1074 = vmatpush.bf16.msra.mxu0 %v1746_v26  ;;  %v1782_v15 = vld [vmem:[%s2335_s1 + $0x138] sm:$0xff]  ;;  %v1431_v23 = vor.u32 %v1738_v12, %v1430_v11  ;;  %v1781_v26 = vld [vmem:[%s2335_s1 + $0x130] sm:$0xff]  ;;  %v323_v29 = vrot.slane %v321_v19, 5  ;;  %v1796_v50 = vld [vmem:[%s2335_s1 + $0x1a8] sm:$0xff]  ;;  %v415_v54 = vunpack.c.l.b16 %v2067_v46  ;;  %v428_v57 = vunpack.c.l.b16 %v2161_v41  ;;  %s1401_s11 = sshll.u32 %s236_s12, 2 }
  0x20   : > { %1093 = vmatpush.bf16.msra.mxu1 %v1754_v27  ;;  %v1790_v16 = vld [vmem:[%s2335_s1 + $0x178] sm:$0xff]  ;;  %v437_v22 = vpack.c.b16 %v2107_v7, %v433_v6  ;;  %v1789_v27 = vld [vmem:[%s2335_s1 + $0x170] sm:$0xff]  ;;  %v319_v28 = vrot.slane %v318_v18, 4  ;;  %v1804_v51 = vld [vmem:[%s2335_s1 + $0x1e8] sm:$0xff]  ;;  %s238_s13 = scalar_lea.vmem %s2337_s3, %s1401_s11 }
  0x21   : > { %1112 = vmatpush.bf16.msra.mxu2 %v1762_v30  ;;  %v333_v30 = vrot.slane %v332_v20, 4  ;;  %v1805_v33 = vld [vmem:[%s2335_s1 + $0x1f0] sm:$0xff]  ;;  %v1416_v35 = vld [vmem:[%s2011_s28 + $0x98] sm:$0xf]  ;;  %v1434_v61 = vld [vmem:[%s2011_s28 + $0xa0] sm:$0xf] }
  0x22   : > { %1131 = vmatpush.bf16.msra.mxu3 %v1770_v31  ;;  %v337_v31 = vrot.slane %v335_v21, 5  ;;  %v1414_v34 = vld [vmem:[%s2011_s28 + $0x90] sm:$0xf]  ;;  %v354_v44 = vshrl.u32 %v1416_v35, 16  ;;  %v357_v49 = vshll.u32 %v1416_v35, 16  ;;  %v1803_v6 = vld [vmem:[%s2335_s1 + $0x1e0] sm:$0xff] }
  0x23   : > { %1075 = vmatpush.bf16.msra.mxu0 %v1745_v36  ;;  %v1780_v36 = vld [vmem:[%s2335_s1 + $0x128] sm:$0xff]  ;;  %v340_v42 = vshrl.u32 %v1414_v34, 16  ;;  %v343_v43 = vshll.u32 %v1414_v34, 16  ;;  %v1417_v8 = vld [vmem:[%s2011_s28 + $0x9c] sm:$0x1]  ;;  %v1813_v17 = vld [vmem:[%s2335_s1 + $0x230] sm:$0xff] }
  0x24   : > { %1094 = vmatpush.bf16.msra.mxu1 %v1753_v37  ;;  %v1788_v37 = vld [vmem:[%s2335_s1 + $0x168] sm:$0xff]  ;;  %v338_v40 = vsel %vm2062_vm2, %v333_v30, %v337_v31  ;;  %v356_v3 = vrot.slane %v354_v44, 4  ;;  %v359_v4 = vrot.slane %v357_v49, 5  ;;  %v1778_v9 = vld [vmem:[%s2335_s1 + $0x118] sm:$0xff]  ;;  %v363_v19 = vshll.u32 %v1417_v8, 16  ;;  %v1801_v30 = vld [vmem:[%s2335_s1 + $0x1d0] sm:$0xff] }
  0x25   : > { %1113 = vmatpush.bf16.msra.mxu2 %v1761_v38  ;;  %v2154_v38 = vld [vmem:[%s2011_s28 + $0x58] sm:$0xf]  ;;  %v2181_v59 = vunpack.c.l.b16 %v338_v40  ;;  %v342_v1 = vrot.slane %v340_v42, 4  ;;  %v345_v2 = vrot.slane %v343_v43, 5  ;;  %v1420_v31 = vld [vmem:[%s2011_s28 + $0xa8] sm:$0xf] }
  0x26   : > { %1132 = vmatpush.bf16.msra.mxu3 %v1769_v39  ;;  %v324_v39 = vsel %vm2062_vm2, %v319_v28, %v323_v29  ;;  %v360_v18 = vor.u32 %v359_v4, %v356_v3  ;;  %v1794_v20 = vld [vmem:[%s2335_s1 + $0x198] sm:$0xff]  ;;  %v1418_v28 = vld [vmem:[%s2011_s28 + $0xa0] sm:$0xf]  ;;  %v1793_v29 = vld [vmem:[%s2335_s1 + $0x190] sm:$0xff]  ;;  %v385_v40 = vshll.u32 %v1420_v31, 16 }
  0x27   : > { %1076 = vmatpush.bf16.msra.mxu0 %v1744_v52  ;;  %v1779_v52 = vld [vmem:[%s2335_s1 + $0x120] sm:$0xff]  ;;  %v2179_v58 = vunpack.c.l.b16 %v324_v39  ;;  %v1802_v21 = vld [vmem:[%s2335_s1 + $0x1d8] sm:$0xff]  ;;  %v368_v34 = vshrl.u32 %v1418_v28, 16  ;;  %v371_v35 = vshll.u32 %v1418_v28, 16  ;;  %v382_v39 = vshrl.u32 %v1420_v31, 16  ;;  %v1792_v42 = vld [vmem:[%s2335_s1 + $0x188] sm:$0xff] }
  0x28   : > { %1095 = vmatpush.bf16.msra.mxu1 %v1752_v53  ;;  %v1787_v53 = vld [vmem:[%s2335_s1 + $0x160] sm:$0xff]  ;;  %v1800_v43 = vld [vmem:[%s2335_s1 + $0x1c8] sm:$0xff]  ;;  %v387_v3 = vrot.slane %v385_v40, 5  ;;  %v1810_v31 = vld [vmem:[%s2335_s1 + $0x218] sm:$0xff] }
  0x29   : > { %1114 = vmatpush.bf16.msra.mxu2 %v1760_v55  ;;  %v416_v55 = vunpack.c.l.b16 %v2070_v47  ;;  %v1775_v44 = vld [vmem:[%s2335_s1 + $0x100] sm:$0xff]  ;;  %v1808_v47 = vld [vmem:[%s2335_s1 + $0x208] sm:$0xff] }
  0x2a   : > { %1133 = vmatpush.bf16.msra.mxu3 %v1768_v56  ;;  %v427_v56 = vunpack.c.l.b16 %v2154_v38  ;;  %v1783_v49 = vld [vmem:[%s2335_s1 + $0x140] sm:$0xff]  ;;  %v1812_v38 = vld [vmem:[%s2335_s1 + $0x228] sm:$0xff] }
  0x2b   : > { %1077 = vmatpush.bf16.msra.mxu0 %v1743_v63  ;;  %v1739_v63 = vld [vmem:[%s2011_s28 + $0xa4] sm:$0xf0]  ;;  %v418_v11 = vpack.c.b16 %v416_v55, %v415_v54  ;;  %v1799_v4 = vld [vmem:[%s2335_s1 + $0x1c0] sm:$0xff] }
  0x2c   : > { %1096 = vmatpush.bf16.msra.mxu1 %v1751_v0  ;;  %v1415_v0 = vld [vmem:[%s2011_s28 + $0x94] sm:$0x1]  ;;  %v430_v12 = vpack.c.b16 %v428_v57, %v427_v56 }
  0x2d   : > { %1115 = vmatpush.bf16.msra.mxu2 %v1759_v5  ;;  %v1795_v5 = vld [vmem:[%s2335_s1 + $0x1a0] sm:$0xff] }
  0x2e   : > { %1134 = vmatpush.bf16.msra.mxu3 %v1767_v10  ;;  %1078 = vmatmul.bf16.vlgmr.msra.gmra.mxu0 %v417_v13  ;;  %v1786_v10 = vld [vmem:[%s2335_s1 + $0x158] sm:$0xff]  ;;  %v1435_v13 = vor.u32 %v1739_v63, %v1434_v61  ;;  %v1791_v63 = vld [vmem:[%s2335_s1 + $0x180] sm:$0xff] }
  0x2f   : > { %1146 = vmatpush.bf16.msrb.mxu0 %v1782_v15  ;;  %1097 = vmatmul.bf16.vlgmr.msra.gmra.mxu1 %v429_v14  ;;  %v349_v14 = vshll.u32 %v1415_v0, 16  ;;  %v438_v15 = vpack.c.b16 %v2181_v59, %v2179_v58  ;;  %v1814_v61 = vld [vmem:[%s2335_s1 + $0x238] sm:$0xff]  ;;  %v370_v0 = vrot.slane %v368_v34, 4 }
  0x30   : > { %1165 = vmatpush.bf16.msrb.mxu1 %v1790_v16  ;;  %1116 = vmatmul.bf16.vlgmr.msra.gmra.mxu2 %v437_v22  ;;  %v346_v16 = vor.u32 %v345_v2, %v342_v1  ;;  %v1777_v22 = vld [vmem:[%s2335_s1 + $0x110] sm:$0xff]  ;;  %v373_v1 = vrot.slane %v371_v35, 5  ;;  %v384_v2 = vrot.slane %v382_v39, 4 }
  0x31   : > { %1135 = vmatmul.bf16.vlgmr.msra.gmra.mxu3 %v1431_v23  ;;  %1184 = vmatpush.bf16.msrb.mxu2 %v1798_v24  ;;  %v1785_v23 = vld [vmem:[%s2335_s1 + $0x150] sm:$0xff] }
  0x32   : > { %1203 = vmatpush.bf16.msrb.mxu3 %v1806_v25  ;;  %v347_v24 = vrot.slane %v346_v16, 4  ;;  %v351_v25 = vrot.slane %v349_v14, 5  ;;  %v388_v14 = vor.u32 %v387_v3, %v384_v2  ;;  %v1809_v39 = vld [vmem:[%s2335_s1 + $0x210] sm:$0xff] }
  0x33   : > { %1147 = vmatpush.bf16.msrb.mxu0 %v1781_v26  ;;  %v361_v26 = vrot.slane %v360_v18, 4 }
  0x34   : > { %1166 = vmatpush.bf16.msrb.mxu1 %v1789_v27  ;;  %v365_v27 = vrot.slane %v363_v19, 5 }
  0x35   : > { %1185 = vmatpush.bf16.msrb.mxu2 %v1797_v32  ;;  %v1776_v32 = vld [vmem:[%s2335_s1 + $0x108] sm:$0xff] }
  0x36   : > { %1204 = vmatpush.bf16.msrb.mxu3 %v1805_v33  ;;  %v1784_v33 = vld [vmem:[%s2335_s1 + $0x148] sm:$0xff] }
  0x37   : > { %1148 = vmatpush.bf16.msrb.mxu0 %v1780_v36  ;;  %v352_v36 = vsel %vm2062_vm2, %v347_v24, %v351_v25 }
  0x38   : > { %1167 = vmatpush.bf16.msrb.mxu1 %v1788_v37  ;;  %v366_v37 = vsel %vm2062_vm2, %v361_v26, %v365_v27  ;;  %v1442_v26 = vld [vmem:[%s2011_s28 + $0xe8] sm:$0xf]  ;;  %v1742_v27 = vld [vmem:[%s2011_s28 + $0xec] sm:$0xf0] }
  0x39   : > { %1186 = vmatpush.bf16.msrb.mxu2 %v1796_v50  ;;  %v1438_v50 = vld [vmem:[%s2011_s28 + $0xd8] sm:$0xf] }
  0x3a   : > { %1205 = vmatpush.bf16.msrb.mxu3 %v1804_v51  ;;  %v1741_v51 = vld [vmem:[%s2011_s28 + $0xdc] sm:$0xf0] }
  0x3b   : > { %1149 = vmatpush.bf16.msrb.mxu0 %v1779_v52  ;;  %v465_v52 = vunpack.c.l.b16 %v352_v36  ;;  %v1439_v8 = vor.u32 %v1741_v51, %v1438_v50 }
  0x3c   : > { %1168 = vmatpush.bf16.msrb.mxu1 %v1787_v53  ;;  %v466_v53 = vunpack.c.l.b16 %v366_v37 }
  0x3d   : > { %1187 = vmatpush.bf16.msrb.mxu2 %v1795_v5  ;;  %v1419_v5 = vld [vmem:[%s2011_s28 + $0xa4] sm:$0x1] }
  0x3e   : > { %1206 = vmatpush.bf16.msrb.mxu3 %v1803_v6  ;;  %1083 = vmatmul.bf16.gmra.mxu0 %v418_v11  ;;  %v1421_v6 = vld [vmem:[%s2011_s28 + $0xac] sm:$0x1]  ;;  %v481_v11 = vpack.c.b16 %v427_v56, %v426_v62 }
  0x3f   : > { %1150 = vmatpush.bf16.msrb.mxu0 %v1778_v9  ;;  %1102 = vmatmul.bf16.gmra.mxu1 %v430_v12  ;;  %v469_v9 = vpack.c.b16 %v466_v53, %v465_v52  ;;  %v374_v12 = vor.u32 %v373_v1, %v370_v0 }
  0x40   : > { %1169 = vmatpush.bf16.msrb.mxu1 %v1786_v10  ;;  %1121 = vmatmul.bf16.gmra.mxu2 %v438_v15  ;;  %v475_v10 = vpack.c.b16 %v415_v54, %v414_v60  ;;  %v391_v15 = vshll.u32 %v1421_v6, 16  ;;  %v389_v60 = vrot.slane %v388_v14, 4  ;;  %v252_v54 = vld [vmem:[%s2011_s28 + $0x20] sm:$0xf] }
  0x41   : > { %1140 = vmatmul.bf16.gmra.mxu3 %v1435_v13  ;;  %1188 = vmatpush.bf16.msrb.mxu2 %v1794_v20  ;;  %v377_v13 = vshll.u32 %v1419_v5, 16  ;;  %v375_v46 = vrot.slane %v374_v12, 4  ;;  %v396_v56 = vshrl.u32 %v252_v54, 16  ;;  %v399_v16 = vshll.u32 %v252_v54, 16  ;;  %v1811_v20 = vld [vmem:[%s2335_s1 + $0x220] sm:$0xff] }
  0x42   : > { %1207 = vmatpush.bf16.msrb.mxu3 %v1802_v21  ;;  %v393_v62 = vrot.slane %v391_v15, 5  ;;  %v1411_v21 = vld [vmem:[%s2011_s28 + $0x68] sm:$0xf]  ;;  %v474_v28 = vunpack.c.l.b16 %v252_v54  ;;  %v1875_v12 = vld [vmem:[%s2336_s2] ss:$0 sm:$0xff] }
  0x43   : > { %1151 = vmatpush.bf16.msrb.mxu0 %v1777_v22  ;;  %v379_v48 = vrot.slane %v377_v13, 5  ;;  %v398_v24 = vrot.slane %v396_v56, 4  ;;  %v401_v25 = vrot.slane %v399_v16, 5 }
  0x44   : > { %1170 = vmatpush.bf16.msrb.mxu1 %v1785_v23  ;;  %v394_v19 = vsel %vm2062_vm2, %v389_v60, %v393_v62  ;;  %v476_v36 = vpack.c.b16 %v474_v28, %v416_v55  ;;  %v1807_v55 = vld [vmem:[%s2335_s1 + $0x200] sm:$0xff] }
  0x45   : > { %1189 = vmatpush.bf16.msrb.mxu2 %v1793_v29  ;;  %v380_v18 = vsel %vm2062_vm2, %v375_v46, %v379_v48  ;;  %v468_v23 = vunpack.c.l.b16 %v394_v19  ;;  %v480_v29 = vunpack.c.l.b16 %v1411_v21  ;;  %v402_v34 = vor.u32 %v401_v25, %v398_v24 }
  0x46   : > { %1208 = vmatpush.bf16.msrb.mxu3 %v1801_v30  ;;  %v467_v22 = vunpack.c.l.b16 %v380_v18  ;;  %v253_v30 = vld [vmem:[%s2011_s28 + $0x24] sm:$0x1] }
  0x47   : > { %1152 = vmatpush.bf16.msrb.mxu0 %v1776_v32  ;;  %v1443_v32 = vor.u32 %v1742_v27, %v1442_v26  ;;  %v405_v35 = vshll.u32 %v253_v30, 16  ;;  %v482_v37 = vpack.c.b16 %v480_v29, %v428_v57  ;;  %v403_v40 = vrot.slane %v402_v34, 4 }
  0x48   : > { %1171 = vmatpush.bf16.msrb.mxu1 %v1784_v33  ;;  %v470_v33 = vpack.c.b16 %v468_v23, %v467_v22 }
  0x49   : > { %1190 = vmatpush.bf16.msrb.mxu2 %v1792_v42  ;;  %v407_v42 = vrot.slane %v405_v35, 5 }
  0x4a   : > { %1209 = vmatpush.bf16.msrb.mxu3 %v1800_v43  ;;  %v486_v43 = vpack.c.b16 %v2179_v58, %v2107_v7 }
  0x4b   : > { %1153 = vmatpush.bf16.msrb.mxu0 %v1775_v44  ;;  %v408_v41 = vsel %vm2062_vm2, %v403_v40, %v407_v42 }
  0x4c   : > { %1172 = vmatpush.bf16.msrb.mxu1 %v1783_v49  ;;  %v485_v57 = vunpack.c.l.b16 %v408_v41 }
  0x4d   : > { %1191 = vmatpush.bf16.msrb.mxu2 %v1791_v63 }
  0x4e   : > { %1210 = vmatpush.bf16.msrb.mxu3 %v1799_v4  ;;  %1154 = vmatmul.bf16.vlgmr.msrb.gmra.mxu0 %v1439_v8  ;;  %v487_v44 = vpack.c.b16 %v485_v57, %v2181_v59 }
  0x4f   : > { %1222 = vmatpush.bf16.msra.mxu0 %v1814_v61  ;;  %1173 = vmatmul.bf16.vlgmr.msrb.gmra.mxu1 %v469_v9 }
  0x50   : > { %1826 = vmatpush.bf16.msra.mxu1 %v1814_v61  ;;  %1192 = vmatmul.bf16.vlgmr.msrb.gmra.mxu2 %v475_v10 }
  0x51   : > { %1211 = vmatmul.bf16.vlgmr.msrb.gmra.mxu3 %v481_v11 }
  0x53   : > { %1223 = vmatpush.bf16.msra.mxu0 %v1813_v17 }
  0x54   : > { %1827 = vmatpush.bf16.msra.mxu1 %v1813_v17 }
  0x57   : > { %1224 = vmatpush.bf16.msra.mxu0 %v1812_v38 }
  0x58   : > { %1828 = vmatpush.bf16.msra.mxu1 %v1812_v38 }
  0x5b   : > { %1225 = vmatpush.bf16.msra.mxu0 %v1811_v20 }
  0x5c   : > { %1829 = vmatpush.bf16.msra.mxu1 %v1811_v20 }
  0x5e   : > { %1159 = vmatmul.bf16.gmra.mxu0 %v1443_v32 }
  0x5f   : > { %1226 = vmatpush.bf16.msra.mxu0 %v1810_v31  ;;  %1178 = vmatmul.bf16.gmra.mxu1 %v470_v33 }
  0x60   : > { %1830 = vmatpush.bf16.msra.mxu1 %v1810_v31  ;;  %1197 = vmatmul.bf16.gmra.mxu2 %v476_v36 }
  0x61   : > { %1216 = vmatmul.bf16.gmra.mxu3 %v482_v37 }
  0x63   : > { %1227 = vmatpush.bf16.msra.mxu0 %v1809_v39 }
  0x64   : > { %1831 = vmatpush.bf16.msra.mxu1 %v1809_v39 }
  0x67   : > { %1228 = vmatpush.bf16.msra.mxu0 %v1808_v47 }
  0x68   : > { %1832 = vmatpush.bf16.msra.mxu1 %v1808_v47 }
  0x6b   : > { %1229 = vmatpush.bf16.msra.mxu0 %v1807_v55 }
  0x6c   : > { %1833 = vmatpush.bf16.msra.mxu1 %v1807_v55 }
  0x6e   : > { %1230 = vmatmul.bf16.vlgmr.msra.gmra.mxu0 %v486_v43 }
  0x6f   : > { %1235 = vmatmul.bf16.vlgmr.msra.gmra.mxu1 %v487_v44 }
  0xab   : > { %v1079_v49 = vpop.f32.mrf.mxu0 }
  0xac   : > { %v1098_v50 = vpop.f32.mrf.mxu1  ;;  %v1080_v13 = vadd.f32 %v1875_v12, %v1079_v49 }
  0xae   : > { %v1099_v38 = vadd.f32 %v1098_v50, %v1080_v13 }
  0xb3   : > { %v1117_v45 = vpop.f32.mrf.mxu2  ;;  %v1081_v52 = vpop.f32.mrf.mxu0 }
  0xb4   : > { %v1136_v51 = vpop.f32.mrf.mxu3  ;;  %v1100_v53 = vpop.f32.mrf.mxu1  ;;  %v1082_v48 = vadd.f32 %v1875_v12, %v1081_v52  ;;  %v1118_v56 = vadd.f32 %v1117_v45, %v1099_v38 }
  0xb6   : > { %v1101_v16 = vadd.f32 %v1100_v53, %v1082_v48  ;;  %v1137_v25 = vadd.f32 %v1136_v51, %v1118_v56 }
  0xbb   : > { %v1119_v61 = vpop.f32.mrf.mxu2  ;;  %v1084_v0 = vpop.f32.mrf.mxu0 }
  0xbc   : > { %v1138_v63 = vpop.f32.mrf.mxu3  ;;  %v1103_v1 = vpop.f32.mrf.mxu1  ;;  %v1085_v14 = vadd.f32 %v1875_v12, %v1084_v0  ;;  %v1120_v20 = vadd.f32 %v1119_v61, %v1101_v16 }
  0xbe   : > { %v1104_v54 = vadd.f32 %v1103_v1, %v1085_v14  ;;  %v1139_v27 = vadd.f32 %v1138_v63, %v1120_v20 }
  0xc3   : > { %v1122_v2 = vpop.f32.mrf.mxu2  ;;  %v1086_v4 = vpop.f32.mrf.mxu0 }
  0xc4   : > { %v1141_v3 = vpop.f32.mrf.mxu3  ;;  %v1105_v5 = vpop.f32.mrf.mxu1  ;;  %v1087_v60 = vadd.f32 %v1875_v12, %v1086_v4  ;;  %v1123_v18 = vadd.f32 %v1122_v2, %v1104_v54 }
  0xc6   : > { %v1106_v19 = vadd.f32 %v1105_v5, %v1087_v60  ;;  %v1142_v26 = vadd.f32 %v1141_v3, %v1123_v18 }
  0xcb   : > { %v1124_v6 = vpop.f32.mrf.mxu2  ;;  %v1155_v58 = vpop.f32.mrf.mxu0 }
  0xcc   : > { %v1143_v7 = vpop.f32.mrf.mxu3  ;;  %v1174_v59 = vpop.f32.mrf.mxu1  ;;  %v1125_v21 = vadd.f32 %v1124_v6, %v1106_v19  ;;  %v1156_v29 = vadd.f32 %v1155_v58, %v1137_v25 }
  0xce   : > { %v1144_v28 = vadd.f32 %v1143_v7, %v1125_v21  ;;  %v1175_v34 = vadd.f32 %v1174_v59, %v1156_v29 }
  0xd3   : > { %v1193_v8 = vpop.f32.mrf.mxu2  ;;  %v1157_v10 = vpop.f32.mrf.mxu0 }
  0xd4   : > { %v1212_v9 = vpop.f32.mrf.mxu3  ;;  %v1176_v11 = vpop.f32.mrf.mxu1  ;;  %v1158_v32 = vadd.f32 %v1157_v10, %v1139_v27  ;;  %v1194_v40 = vadd.f32 %v1193_v8, %v1175_v34 }
  0xd6   : > { %v1177_v42 = vadd.f32 %v1176_v11, %v1158_v32  ;;  %v1213_v43 = vadd.f32 %v1212_v9, %v1194_v40 }
  0xdb   : > { %v1195_v15 = vpop.f32.mrf.mxu2  ;;  %v1160_v17 = vpop.f32.mrf.mxu0 }
  0xdc   : > { %v1179_v46 = vpop.f32.mrf.mxu1  ;;  %v1214_v62 = vpop.f32.mrf.mxu3  ;;  %v1161_v30 = vadd.f32 %v1160_v17, %v1142_v26  ;;  %v1196_v55 = vadd.f32 %v1195_v15, %v1177_v42 }
  0xde   : > { %v1180_v35 = vadd.f32 %v1179_v46, %v1161_v30  ;;  %v1215_v50 = vadd.f32 %v1214_v62, %v1196_v55 }
  0xe3   : > { %v1198_v22 = vpop.f32.mrf.mxu2  ;;  %v1162_v23 = vpop.f32.mrf.mxu0 }
  0xe4   : > { %v1181_v24 = vpop.f32.mrf.mxu1  ;;  %v1217_v31 = vpop.f32.mrf.mxu3  ;;  %v1163_v33 = vadd.f32 %v1162_v23, %v1144_v28  ;;  %v1199_v47 = vadd.f32 %v1198_v22, %v1180_v35 }
  0xe6   : > { %v1182_v41 = vadd.f32 %v1181_v24, %v1163_v33  ;;  %v1218_v44 = vadd.f32 %v1217_v31, %v1199_v47 }
  0xeb   : > { %v1200_v36 = vpop.f32.mrf.mxu2  ;;  %v1231_v37 = vpop.f32.mrf.mxu0 }
  0xec   : > { %v1236_v39 = vpop.f32.mrf.mxu1  ;;  %v1201_v57 = vadd.f32 %v1200_v36, %v1182_v41  ;;  %v1219_v49 = vpop.f32.mrf.mxu3  ;;  %v1232_v51 = vadd.f32 %v1231_v37, %v1213_v43 }
  0xed   : > { %v1237_v52 = vadd.f32 %v1236_v39, %v1218_v44 }
  0xee   : > { %v1220_v45 = vadd.f32 %v1219_v49, %v1201_v57  ;;  %v1241_v1 = vmax.f32 %v1232_v51, 0.0 }
  0xef   : > { %v1243_v2 = vmax.f32 %v1237_v52, 0.0 }
  0xf3   : > { %v1233_v53 = vpop.f32.mrf.mxu0 }
  0xf4   : > { %v1238_v61 = vpop.f32.mrf.mxu1  ;;  %v1234_v63 = vadd.f32 %v1233_v53, %v1215_v50 }
  0xf5   : > { %v1239_v0 = vadd.f32 %v1238_v61, %v1220_v45 }
  0xf6   : > { %v1242_v3 = vmax.f32 %v1234_v63, 0.0 }
  0xf7   : > { %v1244_v4 = vmax.f32 %v1239_v0, 0.0 }
  0xf8   : > { %v1818_v5 = vpack.c.bf16 %v1242_v3, %v1241_v1 }
  0xf9   : > { %v1823_v6 = vpack.c.bf16 %v1244_v4, %v1243_v2 }
  0xfa   : > { %1819 = vst [vmem:[%s238_s13] sm:$0xff] %v1818_v5  }
  0xfb   : > { %1825 = vst [vmem:[%s238_s13 + $0x8] sm:$0xff] %v1823_v6  }
  0xfc PF: > { %s13_s16 = sadd.s32 1, %s1914_s16   ;;  %s2340_s12 = smov %s1906_s14 }
  0xfd   : > { %p10_p7 = scmp.ge.s32.totalorder %s13_s16, 6   ;;  %s2341_s13 = smov %s1910_s15 }
  0xfe   : > { %s2342_s14 = smov %s2345_s17  ;;  %s2343_s15 = smov %s2349_s18 }
  0xff   :  { %12 = sbr.rel (!%p10_p7) target bundleno = 3 (0x3), region = 72 }

// kernel: bottleneck_forward.5
= control target key start
LH: loop header
LB: loop body
LE: loop exit
PB: predicated region body
PF: predicated region fallthrough
CT: control target
= control target key end

     0   :  { %vm273_vm0 = vcmask 130048   ;;  %s793_s1 = inlined_call_operand.vmem [shape: bf16[128,128], index: 1, kind: input, shape index: {}]   ;;  %s794_s4 = inlined_call_operand.vmem [shape: bf16[16,128], index: 4, kind: input, shape index: {}]   ;;  %s795_s3 = inlined_call_operand.vmem [shape: bf16[128,16], index: 3, kind: input, shape index: {}]   ;;  %s796_s5 = inlined_call_operand.vmem [shape: f32[1,128], index: 5, kind: input, shape index: {}]   ;;  %s797_s0 = inlined_call_operand.vmem [shape: bf16[128,128], index: 0, kind: input, shape index: {}]   ;;  %s798_s2 = inlined_call_operand.vmem [shape: f32[1,128], index: 2, kind: input, shape index: {}]   ;;  %s799_s6 = inlined_call_operand.vmem [shape: bf16[128,128], index: 6, kind: output, shape index: {}]  }
   0x1   :  { %v538_v0 = vld [vmem:[%s793_s1 + $0x38] sm:$0xff]  ;;  %v547_v1 = vld [vmem:[%s794_s4] sm:$0xff]  ;;  %v537_v3 = vld [vmem:[%s793_s1 + $0x30] sm:$0xff] }
   0x2   :  { %156 = vmatpush.bf16.msra.mxu0 %v538_v0  ;;  %595 = vmatpush.bf16.msra.mxu2 %v538_v0  ;;  %v539_v2 = vld [vmem:[%s795_s3] sm:$0xff]  ;;  %v536_v4 = vld [vmem:[%s793_s1 + $0x28] sm:$0xff]  ;;  %v534_v7 = vld [vmem:[%s793_s1 + $0x18] sm:$0xff] }
   0x3   :  { %305 = vmatpush.bf16.msra.mxu1 %v547_v1  ;;  %603 = vmatpush.bf16.msra.mxu3 %v547_v1  ;;  %v544_v5 = vld [vmem:[%s795_s3 + $0x28] sm:$0xff]  ;;  %v535_v6 = vld [vmem:[%s793_s1 + $0x20] sm:$0xff]  ;;  %v533_v9 = vld [vmem:[%s793_s1 + $0x10] sm:$0xff] }
   0x4   :  { %v540_v8 = vld [vmem:[%s795_s3 + $0x8] sm:$0xff]  ;;  %v545_v11 = vld [vmem:[%s795_s3 + $0x30] sm:$0xff]  ;;  %v531_v12 = vld [vmem:[%s793_s1] sm:$0xff] }
   0x5   :  { %v532_v10 = vld [vmem:[%s793_s1 + $0x8] sm:$0xff]  ;;  %v523_v13 = vld [vmem:[%s797_s0] sm:$0xff]  ;;  %v541_v15 = vld [vmem:[%s795_s3 + $0x10] sm:$0xff] }
   0x6   :  { %515 = vmatmul.msk.bf16.vlgmr.msra.gmra.mxu1 %vm273_vm0, %v539_v2  ;;  %157 = vmatpush.bf16.msra.mxu0 %v537_v3  ;;  %v527_v14 = vld [vmem:[%s797_s0 + $0x20] sm:$0xff]  ;;  %v546_v16 = vld [vmem:[%s795_s3 + $0x38] sm:$0xff]  ;;  %v524_v17 = vld [vmem:[%s797_s0 + $0x8] sm:$0xff] }
   0x7   :  { %596 = vmatpush.bf16.msra.mxu2 %v537_v3  ;;  %520 = vmatmul.msk.bf16.vlgmr.msra.gmra.mxu3 %vm273_vm0, %v544_v5  ;;  %v528_v18 = vld [vmem:[%s797_s0 + $0x28] sm:$0xff]  ;;  %v542_v19 = vld [vmem:[%s795_s3 + $0x18] sm:$0xff]  ;;  %v525_v20 = vld [vmem:[%s797_s0 + $0x10] sm:$0xff] }
   0x8   :  { %v529_v21 = vld [vmem:[%s797_s0 + $0x30] sm:$0xff]  ;;  %v543_v22 = vld [vmem:[%s795_s3 + $0x20] sm:$0xff]  ;;  %v526_v23 = vld [vmem:[%s797_s0 + $0x18] sm:$0xff] }
   0x9   :  { %v530_v24 = vld [vmem:[%s797_s0 + $0x38] sm:$0xff]  ;;  %v727_v30 = vld [vmem:[%s798_s2] ss:$0 sm:$0xff] }
   0xa   :  { %158 = vmatpush.bf16.msra.mxu0 %v536_v4  ;;  %v732_v31 = vld [vmem:[%s796_s5] ss:$0 sm:$0xff] }
   0xb   :  { %597 = vmatpush.bf16.msra.mxu2 %v536_v4 }
   0xe   :  { %159 = vmatpush.bf16.msra.mxu0 %v535_v6 }
   0xf   :  { %598 = vmatpush.bf16.msra.mxu2 %v535_v6 }
  0x12   :  { %160 = vmatpush.bf16.msra.mxu0 %v534_v7 }
  0x13   :  { %599 = vmatpush.bf16.msra.mxu2 %v534_v7 }
  0x16   :  { %516 = vmatmul.msk.bf16.gmra.mxu1 %vm273_vm0, %v540_v8  ;;  %161 = vmatpush.bf16.msra.mxu0 %v533_v9 }
  0x17   :  { %600 = vmatpush.bf16.msra.mxu2 %v533_v9  ;;  %521 = vmatmul.msk.bf16.gmra.mxu3 %vm273_vm0, %v545_v11 }
  0x1a   :  { %162 = vmatpush.bf16.msra.mxu0 %v532_v10 }
  0x1b   :  { %601 = vmatpush.bf16.msra.mxu2 %v532_v10 }
  0x1e   :  { %163 = vmatpush.bf16.msra.mxu0 %v531_v12 }
  0x1f   :  { %602 = vmatpush.bf16.msra.mxu2 %v531_v12 }
  0x21   :  { %164 = vmatmul.bf16.vlgmr.msra.gmra.mxu0 %v523_v13 }
  0x22   :  { %184 = vmatmul.bf16.vlgmr.msra.gmra.mxu2 %v527_v14 }
  0x26   :  { %517 = vmatmul.msk.bf16.gmra.mxu1 %vm273_vm0, %v541_v15 }
  0x27   :  { %522 = vmatmul.msk.bf16.gmra.mxu3 %vm273_vm0, %v546_v16 }
  0x31   :  { %169 = vmatmul.bf16.gmra.mxu0 %v524_v17 }
  0x32   :  { %189 = vmatmul.bf16.gmra.mxu2 %v528_v18 }
  0x36   :  { %518 = vmatmul.msk.bf16.gmra.mxu1 %vm273_vm0, %v542_v19 }
  0x41   :  { %174 = vmatmul.bf16.gmra.mxu0 %v525_v20 }
  0x42   :  { %194 = vmatmul.bf16.gmra.mxu2 %v529_v21 }
  0x46   :  { %519 = vmatmul.msk.bf16.gmra.mxu1 %vm273_vm0, %v543_v22 }
  0x51   :  { %179 = vmatmul.bf16.gmra.mxu0 %v526_v23 }
  0x52   :  { %199 = vmatmul.bf16.gmra.mxu2 %v530_v24 }
  0x83   :  { %v307_v25 = vpop.f32.mrf.mxu1 }
  0x84   :  { %v308_v34 = vadd.f32 %v732_v31, %v307_v25 }
  0x8a   :  { %v332_v41 = vpop.f32.mrf.mxu3 }
  0x8b   :  { %v309_v26 = vpop.f32.mrf.mxu1  ;;  %v333_v58 = vadd.f32 %v732_v31, %v332_v41 }
  0x8c   :  { %v310_v37 = vadd.f32 %v732_v31, %v309_v26 }
  0x92   :  { %v334_v50 = vpop.f32.mrf.mxu3 }
  0x93   :  { %v312_v27 = vpop.f32.mrf.mxu1  ;;  %v335_v3 = vadd.f32 %v732_v31, %v334_v50 }
  0x94   :  { %v313_v51 = vadd.f32 %v732_v31, %v312_v27 }
  0x9a   :  { %v337_v1 = vpop.f32.mrf.mxu3 }
  0x9b   :  { %v314_v28 = vpop.f32.mrf.mxu1  ;;  %v338_v22 = vadd.f32 %v732_v31, %v337_v1 }
  0x9c   :  { %v315_v54 = vadd.f32 %v732_v31, %v314_v28 }
  0x9e   :  { %v165_v29 = vpop.f32.mrf.mxu0 }
  0x9f   :  { %v166_v32 = vadd.f32 %v727_v30, %v165_v29 }
  0xa1   :  { %v347_v38 = vadd.f32 %v308_v34, %v166_v32 }
  0xa2   :  { %v339_v17 = vpop.f32.mrf.mxu3 }
  0xa3   :  { %v317_v33 = vpop.f32.mrf.mxu1  ;;  %v363_v42 = vmax.f32 %v347_v38, 0.0 }
  0xa4   :  { %v318_v12 = vadd.f32 %v732_v31, %v317_v33 }
  0xa5   :  { %v185_v35 = vpop.f32.mrf.mxu2 }
  0xa6   :  { %v167_v36 = vpop.f32.mrf.mxu0  ;;  %v186_v21 = vadd.f32 %v727_v30, %v185_v35 }
  0xa7   :  { %v168_v39 = vadd.f32 %v727_v30, %v167_v36  ;;  %v340_v36 = vadd.f32 %v732_v31, %v339_v17 }
  0xa9   :  { %v348_v40 = vadd.f32 %v310_v37, %v168_v39 }
  0xab   :  { %v364_v43 = vmax.f32 %v348_v40, 0.0  ;;  %v319_v44 = vpop.f32.mrf.mxu1 }
  0xac   :  { %v320_v15 = vadd.f32 %v732_v31, %v319_v44 }
  0xad   :  { %v551_v45 = vpack.c.bf16 %v364_v43, %v363_v42  ;;  %v187_v46 = vpop.f32.mrf.mxu2  ;;  %v342_v42 = vpop.f32.mrf.mxu3 }
  0xae   :  { %v170_v47 = vpop.f32.mrf.mxu0  ;;  %v188_v27 = vadd.f32 %v727_v30, %v187_v46 }
  0xaf   :  { %552 = vst [vmem:[%s799_s6] sm:$0xff] %v551_v45   ;;  %v171_v48 = vadd.f32 %v727_v30, %v170_v47 }
  0xb1   :  { %v349_v55 = vadd.f32 %v313_v51, %v171_v48 }
  0xb3   :  { %v742_v49 = vpop.f32.mrf.mxu1  ;;  %v365_v60 = vmax.f32 %v349_v55, 0.0 }
  0xb4   :  { %v323_v48 = vadd.f32 %v732_v31, %v742_v49 }
  0xb5   :  { %v190_v52 = vpop.f32.mrf.mxu2 }
  0xb6   :  { %v172_v53 = vpop.f32.mrf.mxu0  ;;  %v191_v59 = vadd.f32 %v727_v30, %v190_v52 }
  0xb7   :  { %v173_v56 = vadd.f32 %v727_v30, %v172_v53 }
  0xb8   :  { %v357_v2 = vadd.f32 %v333_v58, %v191_v59  ;;  %v344_v59 = vpop.f32.mrf.mxu3 }
  0xb9   :  { %v350_v57 = vadd.f32 %v315_v54, %v173_v56  ;;  %v343_v56 = vadd.f32 %v732_v31, %v342_v42 }
  0xba   :  { %v373_v7 = vmax.f32 %v357_v2, 0.0 }
  0xbb   :  { %v366_v61 = vmax.f32 %v350_v57, 0.0  ;;  %v324_v62 = vpop.f32.mrf.mxu1 }
  0xbc   :  { %v325_v52 = vadd.f32 %v732_v31, %v324_v62 }
  0xbd   :  { %v556_v63 = vpack.c.bf16 %v366_v61, %v365_v60  ;;  %v192_v0 = vpop.f32.mrf.mxu2 }
  0xbe   :  { %v193_v4 = vadd.f32 %v727_v30, %v192_v0  ;;  %v175_v5 = vpop.f32.mrf.mxu0  ;;  %v345_v0 = vadd.f32 %v732_v31, %v344_v59 }
  0xbf   :  { %588 = vst [vmem:[%s799_s6 + $0x8] sm:$0xff] %v556_v63   ;;  %v176_v9 = vadd.f32 %v727_v30, %v175_v5 }
  0xc0   :  { %v358_v6 = vadd.f32 %v335_v3, %v193_v4 }
  0xc1   :  { %v351_v16 = vadd.f32 %v318_v12, %v176_v9 }
  0xc2   :  { %v374_v8 = vmax.f32 %v358_v6, 0.0 }
  0xc3   :  { %v327_v10 = vpop.f32.mrf.mxu1  ;;  %v367_v24 = vmax.f32 %v351_v16, 0.0 }
  0xc4   :  { %v576_v11 = vpack.c.bf16 %v374_v8, %v373_v7  ;;  %v328_v19 = vadd.f32 %v732_v31, %v327_v10 }
  0xc5   :  { %v195_v13 = vpop.f32.mrf.mxu2 }
  0xc6   :  { %592 = vst [vmem:[%s799_s6 + $0x28] sm:$0xff] %v576_v11   ;;  %v177_v14 = vpop.f32.mrf.mxu0  ;;  %v196_v23 = vadd.f32 %v727_v30, %v195_v13  ;;  %v355_v28 = vadd.f32 %v328_v19, %v186_v21 }
  0xc7   :  { %v178_v18 = vadd.f32 %v727_v30, %v177_v14 }
  0xc8   :  { %v359_v34 = vadd.f32 %v338_v22, %v196_v23  ;;  %v371_v39 = vmax.f32 %v355_v28, 0.0 }
  0xc9   :  { %v352_v20 = vadd.f32 %v320_v15, %v178_v18 }
  0xca   :  { %v375_v43 = vmax.f32 %v359_v34, 0.0 }
  0xcb   :  { %v368_v25 = vmax.f32 %v352_v20, 0.0  ;;  %v329_v26 = vpop.f32.mrf.mxu1 }
  0xcc   :  { %v330_v29 = vadd.f32 %v732_v31, %v329_v26 }
  0xcd   :  { %v561_v32 = vpack.c.bf16 %v368_v25, %v367_v24  ;;  %v197_v33 = vpop.f32.mrf.mxu2 }
  0xce   :  { %v356_v37 = vadd.f32 %v330_v29, %v188_v27  ;;  %v198_v35 = vadd.f32 %v727_v30, %v197_v33  ;;  %v180_v38 = vpop.f32.mrf.mxu0 }
  0xcf   :  { %589 = vst [vmem:[%s799_s6 + $0x10] sm:$0xff] %v561_v32   ;;  %v181_v46 = vadd.f32 %v727_v30, %v180_v38 }
  0xd0   :  { %v372_v40 = vmax.f32 %v356_v37, 0.0  ;;  %v360_v41 = vadd.f32 %v340_v36, %v198_v35 }
  0xd1   :  { %v353_v53 = vadd.f32 %v323_v48, %v181_v46 }
  0xd2   :  { %v571_v44 = vpack.c.bf16 %v372_v40, %v371_v39  ;;  %v376_v45 = vmax.f32 %v360_v41, 0.0 }
  0xd3   :  { %v369_v58 = vmax.f32 %v353_v53, 0.0 }
  0xd4   :  { %591 = vst [vmem:[%s799_s6 + $0x20] sm:$0xff] %v571_v44   ;;  %v581_v47 = vpack.c.bf16 %v376_v45, %v375_v43 }
  0xd5   :  { %v200_v50 = vpop.f32.mrf.mxu2 }
  0xd6   :  { %593 = vst [vmem:[%s799_s6 + $0x30] sm:$0xff] %v581_v47   ;;  %v182_v51 = vpop.f32.mrf.mxu0  ;;  %v201_v57 = vadd.f32 %v727_v30, %v200_v50 }
  0xd7   :  { %v183_v54 = vadd.f32 %v727_v30, %v182_v51 }
  0xd8   :  { %v361_v63 = vadd.f32 %v343_v56, %v201_v57 }
  0xd9   :  { %v354_v55 = vadd.f32 %v325_v52, %v183_v54 }
  0xda   :  { %v377_v2 = vmax.f32 %v361_v63, 0.0 }
  0xdb   :  { %v370_v60 = vmax.f32 %v354_v55, 0.0 }
  0xdd   :  { %v566_v49 = vpack.c.bf16 %v370_v60, %v369_v58  ;;  %v202_v61 = vpop.f32.mrf.mxu2 }
  0xde   :  { %v203_v1 = vadd.f32 %v727_v30, %v202_v61 }
  0xdf   :  { %590 = vst [vmem:[%s799_s6 + $0x18] sm:$0xff] %v566_v49  }
  0xe0   :  { %v362_v62 = vadd.f32 %v345_v0, %v203_v1 }
  0xe2   :  { %v378_v3 = vmax.f32 %v362_v62, 0.0 }
  0xe4   :  { %v586_v4 = vpack.c.bf16 %v378_v3, %v377_v2 }
  0xe6   :  { %594 = vst [vmem:[%s799_s6 + $0x38] sm:$0xff] %v586_v4  }

</bundles_post_ra>
